<compile_context>
chip_gen: v7x
topology: tpu7x:2x2x1
jax: 0.10.0
libtpu: 0.0.40
codegen_flags: <defaults>
</compile_context>

<pallas_src>
import jax
import jax.numpy as jnp
from jax.experimental import pallas as pl
from jax.experimental.pallas import tpu as pltpu


def rnn_model1_kernel(x_ref, wih_ref, whh_ref, bias_ref, h0_ref, c0_ref,
                      wfc_ref, bfc_ref,
                      logits_ref, hout_ref, cout_ref,
                      h_st, c_st, gx_ref, hlast_ref):
    layer = pl.program_id(0)
    tt = pl.program_id(1)
    n_layers = pl.num_programs(0)

    B, H = h0_ref.shape
    t_tile = hlast_ref.shape[0]

    # Initialize the carried (h, c) state once, at the very first grid step.
    @pl.when((layer == 0) & (tt == 0))
    def _():
        h_st[...] = h0_ref[...]
        c_st[...] = c0_ref[...]

    # ---- Hoisted input projection (one big MXU matmul, bias folded in) ----
    # x tile rows are time-major: row = t*B + b, so step t reads a contiguous
    # (B, 4H) slice of gx below.
    gx_ref[...] = (
        jnp.dot(x_ref[...], wih_ref[...], preferred_element_type=jnp.float32)
        + bias_ref[...]
    )

    whh = whh_ref[...]                      # (H, 4H) bf16, reused every step

    # ---- Recurrence: only h @ W_hh + gates on the serial critical path ----
    h = h_st[...]                           # (B, H) f32
    c = c_st[...]
    for t in range(t_tile):                 # static full unroll (t_tile small)
        g = gx_ref[t * B:(t + 1) * B, :] + jnp.dot(
            h.astype(whh.dtype), whh, preferred_element_type=jnp.float32)
        i_g = jax.nn.sigmoid(g[:, 0 * H:1 * H])      # PyTorch gate order i,f,g,o
        f_g = jax.nn.sigmoid(g[:, 1 * H:2 * H])
        g_g = jnp.tanh(g[:, 2 * H:3 * H])
        o_g = jax.nn.sigmoid(g[:, 3 * H:4 * H])
        c = f_g * c + i_g * g_g
        h = o_g * jnp.tanh(c)
        hlast_ref[t] = h                    # consumed by the FC on the last layer

    h_st[...] = h
    c_st[...] = c
    # Constant output block index -> single HBM writeback at grid end; the
    # values from the final (layer, tile) iteration are the returned state.
    hout_ref[...] = h
    cout_ref[...] = c

    # ---- Fused final FC: one (B*t_tile, H) @ (H, V) matmul, last layer only ----
    @pl.when(layer == n_layers - 1)
    def _():
        hv = hlast_ref[...]                                       # (t_tile, B, H)
        # Reorder the cheap H-wide hidden states to batch-major so the V-wide
        # logits come out directly in PyTorch's rnn_out.view(-1, H) row order.
        h_bm = jnp.concatenate([hv[:, b, :] for b in range(B)], axis=0)
        logits = (jnp.dot(h_bm.astype(wfc_ref.dtype), wfc_ref[...],
                          preferred_element_type=jnp.float32)
                  + bfc_ref[...])                                 # (B*t_tile, V)
        for b in range(B):
            logits_ref[b] = logits[b * t_tile:(b + 1) * t_tile, :]


def rnn_model1_forward(x, state, params, *, t_tile=None):
    """x: (B, T, E) f32; state: (h0, c0) each (1, B, H). Returns (logits, state)."""
    B, T, E = x.shape
    h0, c0 = state
    H = h0.shape[-1]
    V = params["w_fc"].shape[0]
    n_rnn = params["w_ih"].shape[0]        # 3 stacked LSTM layers

    if t_tile is None:
        t_tile = T
    assert T % t_tile == 0, "t_tile must divide T"
    nt = T // t_tile

    cdt = jnp.bfloat16                      # MXU operand dtype (f32 accumulation)
    # Time-major flattened x: row = t*B + b (cheap E-wide transpose in XLA).
    x_tm = jnp.transpose(x, (1, 0, 2)).reshape(T * B, E).astype(cdt)
    wih_t = jnp.transpose(params["w_ih"], (0, 2, 1)).astype(cdt)   # (3, E, 4H)
    whh_t = jnp.transpose(params["w_hh"], (0, 2, 1)).astype(cdt)   # (3, H, 4H)
    bias = (params["b_ih"] + params["b_hh"]).astype(jnp.float32)[:, None, :]
    wfc_t = params["w_fc"].T.astype(cdt)                           # (H, V)
    bfc = params["b_fc"].astype(jnp.float32)[None, :]              # (1, V)
    h0f = h0[0].astype(jnp.float32)                                # (B, H)
    c0f = c0[0].astype(jnp.float32)

    out_shapes = (
        jax.ShapeDtypeStruct((B, T, V), jnp.float32),   # logits, batch-major
        jax.ShapeDtypeStruct((B, H), jnp.float32),      # h_n
        jax.ShapeDtypeStruct((B, H), jnp.float32),      # c_n
    )
    in_specs = [
        pl.BlockSpec((t_tile * B, E), lambda l, t: (t, 0)),        # x tile (streamed)
        pl.BlockSpec((None, E, 4 * H), lambda l, t: (l, 0, 0)),    # W_ih[l]^T
        pl.BlockSpec((None, H, 4 * H), lambda l, t: (l, 0, 0)),    # W_hh[l]^T
        pl.BlockSpec((None, 1, 4 * H), lambda l, t: (l, 0, 0)),    # b_ih+b_hh [l]
        pl.BlockSpec((B, H), lambda l, t: (0, 0)),                 # h0
        pl.BlockSpec((B, H), lambda l, t: (0, 0)),                 # c0
        pl.BlockSpec((H, V), lambda l, t: (0, 0)),                 # W_fc^T
        pl.BlockSpec((1, V), lambda l, t: (0, 0)),                 # b_fc
    ]
    out_specs = (
        pl.BlockSpec((B, t_tile, V), lambda l, t: (0, t, 0)),      # logits tile
        pl.BlockSpec((B, H), lambda l, t: (0, 0)),
        pl.BlockSpec((B, H), lambda l, t: (0, 0)),
    )
    scratch_shapes = [
        pltpu.VMEM((B, H), jnp.float32),                # carried h state
        pltpu.VMEM((B, H), jnp.float32),                # carried c state
        pltpu.VMEM((t_tile * B, 4 * H), jnp.float32),   # hoisted input-proj gates
        pltpu.VMEM((t_tile, B, H), jnp.float32),        # last-layer hiddens (tile)
    ]

    logits_btv, h_n, c_n = pl.pallas_call(
        rnn_model1_kernel,
        out_shape=out_shapes,
        grid=(n_rnn, nt),
        in_specs=in_specs,
        out_specs=out_specs,
        scratch_shapes=scratch_shapes,
        compiler_params=pltpu.CompilerParams(
            # Layer chain and time recurrence are strictly sequential.
            dimension_semantics=("arbitrary", "arbitrary"),
            vmem_limit_bytes=32 * 1024 * 1024,
        ),
    )(x_tm, wih_t, whh_t, bias, h0f, c0f, wfc_t, bfc)

    # (B, T, V) -> (B*T, V) is a free reshape (already batch-major).
    logits = logits_btv.reshape(B * T, V)
    return logits, (h_n[None], c_n[None])


def init_params(key, vocab_size, embedding_size, hidden_dim):
    """Deterministic synthetic weights (PyTorch-like U(-1/sqrt(H), 1/sqrt(H)))."""
    k = 1.0 / float(hidden_dim) ** 0.5
    ks = jax.random.split(key, 6)
    return dict(
        w_ih=jax.random.uniform(ks[0], (3, 4 * hidden_dim, embedding_size),
                                jnp.float32, -k, k),
        w_hh=jax.random.uniform(ks[1], (3, 4 * hidden_dim, hidden_dim),
                                jnp.float32, -k, k),
        b_ih=jax.random.uniform(ks[2], (3, 4 * hidden_dim), jnp.float32, -k, k),
        b_hh=jax.random.uniform(ks[3], (3, 4 * hidden_dim), jnp.float32, -k, k),
        w_fc=jax.random.uniform(ks[4], (vocab_size, hidden_dim), jnp.float32, -k, k),
        b_fc=jax.random.uniform(ks[5], (vocab_size,), jnp.float32, -k, k),
    )


def reference_forward(x, state, params):
    """Pure-JAX f32 reference mirroring the PyTorch forward exactly."""
    B, T, E = x.shape
    h, c = state[0][0], state[1][0]
    H = h.shape[-1]
    rnn_out = None
    for l in range(3):
        wih, whh = params["w_ih"][l], params["w_hh"][l]
        b = params["b_ih"][l] + params["b_hh"][l]
        outs = []
        for t in range(T):
            g = x[:, t, :] @ wih.T + h @ whh.T + b
            i_g = jax.nn.sigmoid(g[:, :H])
            f_g = jax.nn.sigmoid(g[:, H:2 * H])
            g_g = jnp.tanh(g[:, 2 * H:3 * H])
            o_g = jax.nn.sigmoid(g[:, 3 * H:])
            c = f_g * c + i_g * g_g
            h = o_g * jnp.tanh(c)
            outs.append(h)
        rnn_out = jnp.stack(outs, axis=1)   # (B, T, H), last layer wins
    logits = rnn_out.reshape(-1, H) @ params["w_fc"].T + params["b_fc"]
    return logits, (h[None], c[None])


if __name__ == "__main__":
    B, T = 2, 8
    vocab_size, embedding_size, hidden_dim, n_layers = 64, 32, 32, 1

    key = jax.random.PRNGKey(0)
    kx, kp = jax.random.split(key)
    x = jax.random.normal(kx, (B, T, embedding_size), jnp.float32)
    params = init_params(kp, vocab_size, embedding_size, hidden_dim)
    state = (jnp.zeros((n_layers, B, hidden_dim), jnp.float32),
             jnp.zeros((n_layers, B, hidden_dim), jnp.float32))

    logits, (h_n, c_n) = rnn_model1_forward(x, state, params)
    jax.block_until_ready((logits, h_n, c_n))

    ref_logits, (rh, rc) = reference_forward(x, state, params)
    assert logits.shape == (B * T, vocab_size)
    assert h_n.shape == (1, B, hidden_dim) and c_n.shape == (1, B, hidden_dim)
    assert jnp.allclose(logits, ref_logits, atol=5e-2, rtol=5e-2)
    assert jnp.allclose(h_n, rh, atol=5e-2, rtol=5e-2)
    assert jnp.allclose(c_n, rc, atol=5e-2, rtol=5e-2)
    print("KERNEL_OK")
</pallas_src>

<mosaic_0001>
module attributes {stable_mosaic.version = 11 : i64} {
  func.func @rnn_model1_kernel(%arg0: i32, %arg1: i32, %arg2: memref<16x32xbf16, #tpu.memory_space<vmem>>, %arg3: memref<1x32x128xbf16, #tpu.memory_space<vmem>>, %arg4: memref<1x32x128xbf16, #tpu.memory_space<vmem>>, %arg5: memref<1x1x128xf32, #tpu.memory_space<vmem>>, %arg6: memref<2x32xf32, #tpu.memory_space<vmem>>, %arg7: memref<2x32xf32, #tpu.memory_space<vmem>>, %arg8: memref<32x64xbf16, #tpu.memory_space<vmem>>, %arg9: memref<1x64xf32, #tpu.memory_space<vmem>>, %arg10: memref<2x8x64xf32, #tpu.memory_space<vmem>>, %arg11: memref<2x32xf32, #tpu.memory_space<vmem>>, %arg12: memref<2x32xf32, #tpu.memory_space<vmem>>, %arg13: memref<2x32xf32, #tpu.memory_space<vmem>>, %arg14: memref<2x32xf32, #tpu.memory_space<vmem>>, %arg15: memref<16x128xf32, #tpu.memory_space<vmem>>, %arg16: memref<8x2x32xf32, #tpu.memory_space<vmem>>) attributes {dimension_semantics = [#tpu.dimension_semantics<arbitrary>, #tpu.dimension_semantics<arbitrary>], iteration_bounds = array<i64: 3, 1>, scalar_prefetch = 0 : i64, scratch_operands = 4 : i64, tpu.core_type = #tpu.core_type<tc>, window_params = [{transform_indices = @transform_0, window_bounds = array<i64: 16, 32>}, {transform_indices = @transform_1, window_bounds = array<i64: 1, 32, 128>}, {transform_indices = @transform_2, window_bounds = array<i64: 1, 32, 128>}, {transform_indices = @transform_3, window_bounds = array<i64: 1, 1, 128>}, {pipeline_mode = #tpu.pipeline_mode<synchronous>, transform_indices = @transform_4, window_bounds = array<i64: 2, 32>}, {pipeline_mode = #tpu.pipeline_mode<synchronous>, transform_indices = @transform_5, window_bounds = array<i64: 2, 32>}, {pipeline_mode = #tpu.pipeline_mode<synchronous>, transform_indices = @transform_6, window_bounds = array<i64: 32, 64>}, {pipeline_mode = #tpu.pipeline_mode<synchronous>, transform_indices = @transform_7, window_bounds = array<i64: 1, 64>}, {transform_indices = @transform_8, window_bounds = array<i64: 2, 8, 64>}, {pipeline_mode = #tpu.pipeline_mode<synchronous>, transform_indices = @transform_9, window_bounds = array<i64: 2, 32>}, {pipeline_mode = #tpu.pipeline_mode<synchronous>, transform_indices = @transform_10, window_bounds = array<i64: 2, 32>}]} {
    %c0_i32 = arith.constant 0 : i32
    %0 = arith.cmpi eq, %arg0, %c0_i32 : i32
    %c0_i32_0 = arith.constant 0 : i32
    %1 = arith.cmpi eq, %arg1, %c0_i32_0 : i32
    %2 = arith.andi %0, %1 : i1
    %3 = arith.extui %2 : i1 to i32
    %c0_i32_1 = arith.constant 0 : i32
    %4 = arith.cmpi ne, %3, %c0_i32_1 : i32
    scf.if %4 {
      %c0_88 = arith.constant 0 : index
      %c0_89 = arith.constant 0 : index
      %281 = vector.load %arg6[%c0_88, %c0_89] : memref<2x32xf32, #tpu.memory_space<vmem>>, vector<2x32xf32>
      %c0_90 = arith.constant 0 : index
      %c0_91 = arith.constant 0 : index
      %282 = vector.load %arg13[%c0_90, %c0_91] : memref<2x32xf32, #tpu.memory_space<vmem>>, vector<2x32xf32>
      tpu.vector_store %arg13[%c0_90, %c0_91], %281 {strides = array<i32>} : memref<2x32xf32, #tpu.memory_space<vmem>>, vector<2x32xf32>,
      %c0_92 = arith.constant 0 : index
      %c0_93 = arith.constant 0 : index
      %283 = vector.load %arg7[%c0_92, %c0_93] : memref<2x32xf32, #tpu.memory_space<vmem>>, vector<2x32xf32>
      %c0_94 = arith.constant 0 : index
      %c0_95 = arith.constant 0 : index
      %284 = vector.load %arg14[%c0_94, %c0_95] : memref<2x32xf32, #tpu.memory_space<vmem>>, vector<2x32xf32>
      tpu.vector_store %arg14[%c0_94, %c0_95], %283 {strides = array<i32>} : memref<2x32xf32, #tpu.memory_space<vmem>>, vector<2x32xf32>,
    } else {
    }
    %c0 = arith.constant 0 : index
    %c0_2 = arith.constant 0 : index
    %5 = vector.load %arg2[%c0, %c0_2] : memref<16x32xbf16, #tpu.memory_space<vmem>>, vector<16x32xbf16>
    %c0_3 = arith.constant 0 : index
    %c0_4 = arith.constant 0 : index
    %c0_5 = arith.constant 0 : index
    %6 = vector.load %arg3[%c0_3, %c0_4, %c0_5] : memref<1x32x128xbf16, #tpu.memory_space<vmem>>, vector<1x32x128xbf16>
    %7 = vector.shape_cast %6 : vector<1x32x128xbf16> to vector<32x128xbf16>
    %cst = arith.constant dense<0.000000e+00> : vector<16x128xf32>
    %8 = tpu.matmul %5, %7, %cst {dimension_numbers = #tpu.dot_dimension_numbers<[1], [0], [0], [1], [0, 0, 1, 1], [], []>} : vector<16x32xbf16>, vector<32x128xbf16>, vector<16x128xf32> -> vector<16x128xf32>
    %c0_6 = arith.constant 0 : index
    %c0_7 = arith.constant 0 : index
    %c0_8 = arith.constant 0 : index
    %9 = vector.load %arg5[%c0_6, %c0_7, %c0_8] : memref<1x1x128xf32, #tpu.memory_space<vmem>>, vector<1x1x128xf32>
    %10 = vector.shape_cast %9 : vector<1x1x128xf32> to vector<1x128xf32>
    %11 = vector.broadcast %10 : vector<1x128xf32> to vector<16x128xf32>
    %12 = arith.addf %8, %11 : vector<16x128xf32>
    %c0_9 = arith.constant 0 : index
    %c0_10 = arith.constant 0 : index
    %13 = vector.load %arg15[%c0_9, %c0_10] : memref<16x128xf32, #tpu.memory_space<vmem>>, vector<16x128xf32>
    tpu.vector_store %arg15[%c0_9, %c0_10], %12 {strides = array<i32>} : memref<16x128xf32, #tpu.memory_space<vmem>>, vector<16x128xf32>,
    %c0_11 = arith.constant 0 : index
    %c0_12 = arith.constant 0 : index
    %c0_13 = arith.constant 0 : index
    %14 = vector.load %arg4[%c0_11, %c0_12, %c0_13] : memref<1x32x128xbf16, #tpu.memory_space<vmem>>, vector<1x32x128xbf16>
    %15 = vector.shape_cast %14 : vector<1x32x128xbf16> to vector<32x128xbf16>
    %c0_14 = arith.constant 0 : index
    %c0_15 = arith.constant 0 : index
    %16 = vector.load %arg13[%c0_14, %c0_15] : memref<2x32xf32, #tpu.memory_space<vmem>>, vector<2x32xf32>
    %c0_16 = arith.constant 0 : index
    %c0_17 = arith.constant 0 : index
    %17 = vector.load %arg14[%c0_16, %c0_17] : memref<2x32xf32, #tpu.memory_space<vmem>>, vector<2x32xf32>
    %c0_18 = arith.constant 0 : index
    %c0_19 = arith.constant 0 : index
    %18 = vector.load %arg15[%c0_18, %c0_19] : memref<16x128xf32, #tpu.memory_space<vmem>>, vector<2x128xf32>
    %19 = arith.truncf %16 : vector<2x32xf32> to vector<2x32xbf16>
    %cst_20 = arith.constant dense<0.000000e+00> : vector<2x128xf32>
    %20 = tpu.matmul %19, %15, %cst_20 {dimension_numbers = #tpu.dot_dimension_numbers<[1], [0], [0], [1], [0, 0, 1, 1], [], []>} : vector<2x32xbf16>, vector<32x128xbf16>, vector<2x128xf32> -> vector<2x128xf32>
    %21 = arith.addf %18, %20 : vector<2x128xf32>
    %22 = vector.extract_strided_slice %21 {offsets = [0, 0], sizes = [2, 32], strides = [1, 1]} : vector<2x128xf32> to vector<2x32xf32>
    %23 = arith.negf %22 : vector<2x32xf32>
    %24 = math.exp %23 : vector<2x32xf32>
    %cst_21 = arith.constant 1.000000e+00 : f32
    %25 = vector.broadcast %cst_21 : f32 to vector<2x32xf32>
    %26 = arith.addf %25, %24 : vector<2x32xf32>
    %27 = arith.divf %25, %26 : vector<2x32xf32>
    %28 = vector.extract_strided_slice %21 {offsets = [0, 32], sizes = [2, 32], strides = [1, 1]} : vector<2x128xf32> to vector<2x32xf32>
    %29 = arith.negf %28 : vector<2x32xf32>
    %30 = math.exp %29 : vector<2x32xf32>
    %cst_22 = arith.constant 1.000000e+00 : f32
    %31 = vector.broadcast %cst_22 : f32 to vector<2x32xf32>
    %32 = arith.addf %31, %30 : vector<2x32xf32>
    %33 = arith.divf %31, %32 : vector<2x32xf32>
    %34 = vector.extract_strided_slice %21 {offsets = [0, 64], sizes = [2, 32], strides = [1, 1]} : vector<2x128xf32> to vector<2x32xf32>
    %35 = math.tanh %34 : vector<2x32xf32>
    %36 = vector.extract_strided_slice %21 {offsets = [0, 96], sizes = [2, 32], strides = [1, 1]} : vector<2x128xf32> to vector<2x32xf32>
    %37 = arith.negf %36 : vector<2x32xf32>
    %38 = math.exp %37 : vector<2x32xf32>
    %cst_23 = arith.constant 1.000000e+00 : f32
    %39 = vector.broadcast %cst_23 : f32 to vector<2x32xf32>
    %40 = arith.addf %39, %38 : vector<2x32xf32>
    %41 = arith.divf %39, %40 : vector<2x32xf32>
    %42 = arith.mulf %33, %17 : vector<2x32xf32>
    %43 = arith.mulf %27, %35 : vector<2x32xf32>
    %44 = arith.addf %42, %43 : vector<2x32xf32>
    %45 = math.tanh %44 : vector<2x32xf32>
    %46 = arith.mulf %41, %45 : vector<2x32xf32>
    %c0_24 = arith.constant 0 : index
    %c0_25 = arith.constant 0 : index
    %c0_26 = arith.constant 0 : index
    %47 = vector.load %arg16[%c0_24, %c0_25, %c0_26] : memref<8x2x32xf32, #tpu.memory_space<vmem>>, vector<1x2x32xf32>
    %48 = vector.shape_cast %47 : vector<1x2x32xf32> to vector<2x32xf32>
    %49 = vector.shape_cast %46 : vector<2x32xf32> to vector<1x2x32xf32>
    tpu.vector_store %arg16[%c0_24, %c0_25, %c0_26], %49 {strides = array<i32>} : memref<8x2x32xf32, #tpu.memory_space<vmem>>, vector<1x2x32xf32>,
    %c2 = arith.constant 2 : index
    %c0_27 = arith.constant 0 : index
    %50 = vector.load %arg15[%c2, %c0_27] : memref<16x128xf32, #tpu.memory_space<vmem>>, vector<2x128xf32>
    %51 = arith.truncf %46 : vector<2x32xf32> to vector<2x32xbf16>
    %cst_28 = arith.constant dense<0.000000e+00> : vector<2x128xf32>
    %52 = tpu.matmul %51, %15, %cst_28 {dimension_numbers = #tpu.dot_dimension_numbers<[1], [0], [0], [1], [0, 0, 1, 1], [], []>} : vector<2x32xbf16>, vector<32x128xbf16>, vector<2x128xf32> -> vector<2x128xf32>
    %53 = arith.addf %50, %52 : vector<2x128xf32>
    %54 = vector.extract_strided_slice %53 {offsets = [0, 0], sizes = [2, 32], strides = [1, 1]} : vector<2x128xf32> to vector<2x32xf32>
    %55 = arith.negf %54 : vector<2x32xf32>
    %56 = math.exp %55 : vector<2x32xf32>
    %cst_29 = arith.constant 1.000000e+00 : f32
    %57 = vector.broadcast %cst_29 : f32 to vector<2x32xf32>
    %58 = arith.addf %57, %56 : vector<2x32xf32>
    %59 = arith.divf %57, %58 : vector<2x32xf32>
    %60 = vector.extract_strided_slice %53 {offsets = [0, 32], sizes = [2, 32], strides = [1, 1]} : vector<2x128xf32> to vector<2x32xf32>
    %61 = arith.negf %60 : vector<2x32xf32>
    %62 = math.exp %61 : vector<2x32xf32>
    %cst_30 = arith.constant 1.000000e+00 : f32
    %63 = vector.broadcast %cst_30 : f32 to vector<2x32xf32>
    %64 = arith.addf %63, %62 : vector<2x32xf32>
    %65 = arith.divf %63, %64 : vector<2x32xf32>
    %66 = vector.extract_strided_slice %53 {offsets = [0, 64], sizes = [2, 32], strides = [1, 1]} : vector<2x128xf32> to vector<2x32xf32>
    %67 = math.tanh %66 : vector<2x32xf32>
    %68 = vector.extract_strided_slice %53 {offsets = [0, 96], sizes = [2, 32], strides = [1, 1]} : vector<2x128xf32> to vector<2x32xf32>
    %69 = arith.negf %68 : vector<2x32xf32>
    %70 = math.exp %69 : vector<2x32xf32>
    %cst_31 = arith.constant 1.000000e+00 : f32
    %71 = vector.broadcast %cst_31 : f32 to vector<2x32xf32>
    %72 = arith.addf %71, %70 : vector<2x32xf32>
    %73 = arith.divf %71, %72 : vector<2x32xf32>
    %74 = arith.mulf %65, %44 : vector<2x32xf32>
    %75 = arith.mulf %59, %67 : vector<2x32xf32>
    %76 = arith.addf %74, %75 : vector<2x32xf32>
    %77 = math.tanh %76 : vector<2x32xf32>
    %78 = arith.mulf %73, %77 : vector<2x32xf32>
    %c1 = arith.constant 1 : index
    %c0_32 = arith.constant 0 : index
    %c0_33 = arith.constant 0 : index
    %79 = vector.load %arg16[%c1, %c0_32, %c0_33] : memref<8x2x32xf32, #tpu.memory_space<vmem>>, vector<1x2x32xf32>
    %80 = vector.shape_cast %79 : vector<1x2x32xf32> to vector<2x32xf32>
    %81 = vector.shape_cast %78 : vector<2x32xf32> to vector<1x2x32xf32>
    tpu.vector_store %arg16[%c1, %c0_32, %c0_33], %81 {strides = array<i32>} : memref<8x2x32xf32, #tpu.memory_space<vmem>>, vector<1x2x32xf32>,
    %c4 = arith.constant 4 : index
    %c0_34 = arith.constant 0 : index
    %82 = vector.load %arg15[%c4, %c0_34] : memref<16x128xf32, #tpu.memory_space<vmem>>, vector<2x128xf32>
    %83 = arith.truncf %78 : vector<2x32xf32> to vector<2x32xbf16>
    %cst_35 = arith.constant dense<0.000000e+00> : vector<2x128xf32>
    %84 = tpu.matmul %83, %15, %cst_35 {dimension_numbers = #tpu.dot_dimension_numbers<[1], [0], [0], [1], [0, 0, 1, 1], [], []>} : vector<2x32xbf16>, vector<32x128xbf16>, vector<2x128xf32> -> vector<2x128xf32>
    %85 = arith.addf %82, %84 : vector<2x128xf32>
    %86 = vector.extract_strided_slice %85 {offsets = [0, 0], sizes = [2, 32], strides = [1, 1]} : vector<2x128xf32> to vector<2x32xf32>
    %87 = arith.negf %86 : vector<2x32xf32>
    %88 = math.exp %87 : vector<2x32xf32>
    %cst_36 = arith.constant 1.000000e+00 : f32
    %89 = vector.broadcast %cst_36 : f32 to vector<2x32xf32>
    %90 = arith.addf %89, %88 : vector<2x32xf32>
    %91 = arith.divf %89, %90 : vector<2x32xf32>
    %92 = vector.extract_strided_slice %85 {offsets = [0, 32], sizes = [2, 32], strides = [1, 1]} : vector<2x128xf32> to vector<2x32xf32>
    %93 = arith.negf %92 : vector<2x32xf32>
    %94 = math.exp %93 : vector<2x32xf32>
    %cst_37 = arith.constant 1.000000e+00 : f32
    %95 = vector.broadcast %cst_37 : f32 to vector<2x32xf32>
    %96 = arith.addf %95, %94 : vector<2x32xf32>
    %97 = arith.divf %95, %96 : vector<2x32xf32>
    %98 = vector.extract_strided_slice %85 {offsets = [0, 64], sizes = [2, 32], strides = [1, 1]} : vector<2x128xf32> to vector<2x32xf32>
    %99 = math.tanh %98 : vector<2x32xf32>
    %100 = vector.extract_strided_slice %85 {offsets = [0, 96], sizes = [2, 32], strides = [1, 1]} : vector<2x128xf32> to vector<2x32xf32>
    %101 = arith.negf %100 : vector<2x32xf32>
    %102 = math.exp %101 : vector<2x32xf32>
    %cst_38 = arith.constant 1.000000e+00 : f32
    %103 = vector.broadcast %cst_38 : f32 to vector<2x32xf32>
    %104 = arith.addf %103, %102 : vector<2x32xf32>
    %105 = arith.divf %103, %104 : vector<2x32xf32>
    %106 = arith.mulf %97, %76 : vector<2x32xf32>
    %107 = arith.mulf %91, %99 : vector<2x32xf32>
    %108 = arith.addf %106, %107 : vector<2x32xf32>
    %109 = math.tanh %108 : vector<2x32xf32>
    %110 = arith.mulf %105, %109 : vector<2x32xf32>
    %c2_39 = arith.constant 2 : index
    %c0_40 = arith.constant 0 : index
    %c0_41 = arith.constant 0 : index
    %111 = vector.load %arg16[%c2_39, %c0_40, %c0_41] : memref<8x2x32xf32, #tpu.memory_space<vmem>>, vector<1x2x32xf32>
    %112 = vector.shape_cast %111 : vector<1x2x32xf32> to vector<2x32xf32>
    %113 = vector.shape_cast %110 : vector<2x32xf32> to vector<1x2x32xf32>
    tpu.vector_store %arg16[%c2_39, %c0_40, %c0_41], %113 {strides = array<i32>} : memref<8x2x32xf32, #tpu.memory_space<vmem>>, vector<1x2x32xf32>,
    %c6 = arith.constant 6 : index
    %c0_42 = arith.constant 0 : index
    %114 = vector.load %arg15[%c6, %c0_42] : memref<16x128xf32, #tpu.memory_space<vmem>>, vector<2x128xf32>
    %115 = arith.truncf %110 : vector<2x32xf32> to vector<2x32xbf16>
    %cst_43 = arith.constant dense<0.000000e+00> : vector<2x128xf32>
    %116 = tpu.matmul %115, %15, %cst_43 {dimension_numbers = #tpu.dot_dimension_numbers<[1], [0], [0], [1], [0, 0, 1, 1], [], []>} : vector<2x32xbf16>, vector<32x128xbf16>, vector<2x128xf32> -> vector<2x128xf32>
    %117 = arith.addf %114, %116 : vector<2x128xf32>
    %118 = vector.extract_strided_slice %117 {offsets = [0, 0], sizes = [2, 32], strides = [1, 1]} : vector<2x128xf32> to vector<2x32xf32>
    %119 = arith.negf %118 : vector<2x32xf32>
    %120 = math.exp %119 : vector<2x32xf32>
    %cst_44 = arith.constant 1.000000e+00 : f32
    %121 = vector.broadcast %cst_44 : f32 to vector<2x32xf32>
    %122 = arith.addf %121, %120 : vector<2x32xf32>
    %123 = arith.divf %121, %122 : vector<2x32xf32>
    %124 = vector.extract_strided_slice %117 {offsets = [0, 32], sizes = [2, 32], strides = [1, 1]} : vector<2x128xf32> to vector<2x32xf32>
    %125 = arith.negf %124 : vector<2x32xf32>
    %126 = math.exp %125 : vector<2x32xf32>
    %cst_45 = arith.constant 1.000000e+00 : f32
    %127 = vector.broadcast %cst_45 : f32 to vector<2x32xf32>
    %128 = arith.addf %127, %126 : vector<2x32xf32>
    %129 = arith.divf %127, %128 : vector<2x32xf32>
    %130 = vector.extract_strided_slice %117 {offsets = [0, 64], sizes = [2, 32], strides = [1, 1]} : vector<2x128xf32> to vector<2x32xf32>
    %131 = math.tanh %130 : vector<2x32xf32>
    %132 = vector.extract_strided_slice %117 {offsets = [0, 96], sizes = [2, 32], strides = [1, 1]} : vector<2x128xf32> to vector<2x32xf32>
    %133 = arith.negf %132 : vector<2x32xf32>
    %134 = math.exp %133 : vector<2x32xf32>
    %cst_46 = arith.constant 1.000000e+00 : f32
    %135 = vector.broadcast %cst_46 : f32 to vector<2x32xf32>
    %136 = arith.addf %135, %134 : vector<2x32xf32>
    %137 = arith.divf %135, %136 : vector<2x32xf32>
    %138 = arith.mulf %129, %108 : vector<2x32xf32>
    %139 = arith.mulf %123, %131 : vector<2x32xf32>
    %140 = arith.addf %138, %139 : vector<2x32xf32>
    %141 = math.tanh %140 : vector<2x32xf32>
    %142 = arith.mulf %137, %141 : vector<2x32xf32>
    %c3 = arith.constant 3 : index
    %c0_47 = arith.constant 0 : index
    %c0_48 = arith.constant 0 : index
    %143 = vector.load %arg16[%c3, %c0_47, %c0_48] : memref<8x2x32xf32, #tpu.memory_space<vmem>>, vector<1x2x32xf32>
    %144 = vector.shape_cast %143 : vector<1x2x32xf32> to vector<2x32xf32>
    %145 = vector.shape_cast %142 : vector<2x32xf32> to vector<1x2x32xf32>
    tpu.vector_store %arg16[%c3, %c0_47, %c0_48], %145 {strides = array<i32>} : memref<8x2x32xf32, #tpu.memory_space<vmem>>, vector<1x2x32xf32>,
    %c8 = arith.constant 8 : index
    %c0_49 = arith.constant 0 : index
    %146 = vector.load %arg15[%c8, %c0_49] : memref<16x128xf32, #tpu.memory_space<vmem>>, vector<2x128xf32>
    %147 = arith.truncf %142 : vector<2x32xf32> to vector<2x32xbf16>
    %cst_50 = arith.constant dense<0.000000e+00> : vector<2x128xf32>
    %148 = tpu.matmul %147, %15, %cst_50 {dimension_numbers = #tpu.dot_dimension_numbers<[1], [0], [0], [1], [0, 0, 1, 1], [], []>} : vector<2x32xbf16>, vector<32x128xbf16>, vector<2x128xf32> -> vector<2x128xf32>
    %149 = arith.addf %146, %148 : vector<2x128xf32>
    %150 = vector.extract_strided_slice %149 {offsets = [0, 0], sizes = [2, 32], strides = [1, 1]} : vector<2x128xf32> to vector<2x32xf32>
    %151 = arith.negf %150 : vector<2x32xf32>
    %152 = math.exp %151 : vector<2x32xf32>
    %cst_51 = arith.constant 1.000000e+00 : f32
    %153 = vector.broadcast %cst_51 : f32 to vector<2x32xf32>
    %154 = arith.addf %153, %152 : vector<2x32xf32>
    %155 = arith.divf %153, %154 : vector<2x32xf32>
    %156 = vector.extract_strided_slice %149 {offsets = [0, 32], sizes = [2, 32], strides = [1, 1]} : vector<2x128xf32> to vector<2x32xf32>
    %157 = arith.negf %156 : vector<2x32xf32>
    %158 = math.exp %157 : vector<2x32xf32>
    %cst_52 = arith.constant 1.000000e+00 : f32
    %159 = vector.broadcast %cst_52 : f32 to vector<2x32xf32>
    %160 = arith.addf %159, %158 : vector<2x32xf32>
    %161 = arith.divf %159, %160 : vector<2x32xf32>
    %162 = vector.extract_strided_slice %149 {offsets = [0, 64], sizes = [2, 32], strides = [1, 1]} : vector<2x128xf32> to vector<2x32xf32>
    %163 = math.tanh %162 : vector<2x32xf32>
    %164 = vector.extract_strided_slice %149 {offsets = [0, 96], sizes = [2, 32], strides = [1, 1]} : vector<2x128xf32> to vector<2x32xf32>
    %165 = arith.negf %164 : vector<2x32xf32>
    %166 = math.exp %165 : vector<2x32xf32>
    %cst_53 = arith.constant 1.000000e+00 : f32
    %167 = vector.broadcast %cst_53 : f32 to vector<2x32xf32>
    %168 = arith.addf %167, %166 : vector<2x32xf32>
    %169 = arith.divf %167, %168 : vector<2x32xf32>
    %170 = arith.mulf %161, %140 : vector<2x32xf32>
    %171 = arith.mulf %155, %163 : vector<2x32xf32>
    %172 = arith.addf %170, %171 : vector<2x32xf32>
    %173 = math.tanh %172 : vector<2x32xf32>
    %174 = arith.mulf %169, %173 : vector<2x32xf32>
    %c4_54 = arith.constant 4 : index
    %c0_55 = arith.constant 0 : index
    %c0_56 = arith.constant 0 : index
    %175 = vector.load %arg16[%c4_54, %c0_55, %c0_56] : memref<8x2x32xf32, #tpu.memory_space<vmem>>, vector<1x2x32xf32>
    %176 = vector.shape_cast %175 : vector<1x2x32xf32> to vector<2x32xf32>
    %177 = vector.shape_cast %174 : vector<2x32xf32> to vector<1x2x32xf32>
    tpu.vector_store %arg16[%c4_54, %c0_55, %c0_56], %177 {strides = array<i32>} : memref<8x2x32xf32, #tpu.memory_space<vmem>>, vector<1x2x32xf32>,
    %c10 = arith.constant 10 : index
    %c0_57 = arith.constant 0 : index
    %178 = vector.load %arg15[%c10, %c0_57] : memref<16x128xf32, #tpu.memory_space<vmem>>, vector<2x128xf32>
    %179 = arith.truncf %174 : vector<2x32xf32> to vector<2x32xbf16>
    %cst_58 = arith.constant dense<0.000000e+00> : vector<2x128xf32>
    %180 = tpu.matmul %179, %15, %cst_58 {dimension_numbers = #tpu.dot_dimension_numbers<[1], [0], [0], [1], [0, 0, 1, 1], [], []>} : vector<2x32xbf16>, vector<32x128xbf16>, vector<2x128xf32> -> vector<2x128xf32>
    %181 = arith.addf %178, %180 : vector<2x128xf32>
    %182 = vector.extract_strided_slice %181 {offsets = [0, 0], sizes = [2, 32], strides = [1, 1]} : vector<2x128xf32> to vector<2x32xf32>
    %183 = arith.negf %182 : vector<2x32xf32>
    %184 = math.exp %183 : vector<2x32xf32>
    %cst_59 = arith.constant 1.000000e+00 : f32
    %185 = vector.broadcast %cst_59 : f32 to vector<2x32xf32>
    %186 = arith.addf %185, %184 : vector<2x32xf32>
    %187 = arith.divf %185, %186 : vector<2x32xf32>
    %188 = vector.extract_strided_slice %181 {offsets = [0, 32], sizes = [2, 32], strides = [1, 1]} : vector<2x128xf32> to vector<2x32xf32>
    %189 = arith.negf %188 : vector<2x32xf32>
    %190 = math.exp %189 : vector<2x32xf32>
    %cst_60 = arith.constant 1.000000e+00 : f32
    %191 = vector.broadcast %cst_60 : f32 to vector<2x32xf32>
    %192 = arith.addf %191, %190 : vector<2x32xf32>
    %193 = arith.divf %191, %192 : vector<2x32xf32>
    %194 = vector.extract_strided_slice %181 {offsets = [0, 64], sizes = [2, 32], strides = [1, 1]} : vector<2x128xf32> to vector<2x32xf32>
    %195 = math.tanh %194 : vector<2x32xf32>
    %196 = vector.extract_strided_slice %181 {offsets = [0, 96], sizes = [2, 32], strides = [1, 1]} : vector<2x128xf32> to vector<2x32xf32>
    %197 = arith.negf %196 : vector<2x32xf32>
    %198 = math.exp %197 : vector<2x32xf32>
    %cst_61 = arith.constant 1.000000e+00 : f32
    %199 = vector.broadcast %cst_61 : f32 to vector<2x32xf32>
    %200 = arith.addf %199, %198 : vector<2x32xf32>
    %201 = arith.divf %199, %200 : vector<2x32xf32>
    %202 = arith.mulf %193, %172 : vector<2x32xf32>
    %203 = arith.mulf %187, %195 : vector<2x32xf32>
    %204 = arith.addf %202, %203 : vector<2x32xf32>
    %205 = math.tanh %204 : vector<2x32xf32>
    %206 = arith.mulf %201, %205 : vector<2x32xf32>
    %c5 = arith.constant 5 : index
    %c0_62 = arith.constant 0 : index
    %c0_63 = arith.constant 0 : index
    %207 = vector.load %arg16[%c5, %c0_62, %c0_63] : memref<8x2x32xf32, #tpu.memory_space<vmem>>, vector<1x2x32xf32>
    %208 = vector.shape_cast %207 : vector<1x2x32xf32> to vector<2x32xf32>
    %209 = vector.shape_cast %206 : vector<2x32xf32> to vector<1x2x32xf32>
    tpu.vector_store %arg16[%c5, %c0_62, %c0_63], %209 {strides = array<i32>} : memref<8x2x32xf32, #tpu.memory_space<vmem>>, vector<1x2x32xf32>,
    %c12 = arith.constant 12 : index
    %c0_64 = arith.constant 0 : index
    %210 = vector.load %arg15[%c12, %c0_64] : memref<16x128xf32, #tpu.memory_space<vmem>>, vector<2x128xf32>
    %211 = arith.truncf %206 : vector<2x32xf32> to vector<2x32xbf16>
    %cst_65 = arith.constant dense<0.000000e+00> : vector<2x128xf32>
    %212 = tpu.matmul %211, %15, %cst_65 {dimension_numbers = #tpu.dot_dimension_numbers<[1], [0], [0], [1], [0, 0, 1, 1], [], []>} : vector<2x32xbf16>, vector<32x128xbf16>, vector<2x128xf32> -> vector<2x128xf32>
    %213 = arith.addf %210, %212 : vector<2x128xf32>
    %214 = vector.extract_strided_slice %213 {offsets = [0, 0], sizes = [2, 32], strides = [1, 1]} : vector<2x128xf32> to vector<2x32xf32>
    %215 = arith.negf %214 : vector<2x32xf32>
    %216 = math.exp %215 : vector<2x32xf32>
    %cst_66 = arith.constant 1.000000e+00 : f32
    %217 = vector.broadcast %cst_66 : f32 to vector<2x32xf32>
    %218 = arith.addf %217, %216 : vector<2x32xf32>
    %219 = arith.divf %217, %218 : vector<2x32xf32>
    %220 = vector.extract_strided_slice %213 {offsets = [0, 32], sizes = [2, 32], strides = [1, 1]} : vector<2x128xf32> to vector<2x32xf32>
    %221 = arith.negf %220 : vector<2x32xf32>
    %222 = math.exp %221 : vector<2x32xf32>
    %cst_67 = arith.constant 1.000000e+00 : f32
    %223 = vector.broadcast %cst_67 : f32 to vector<2x32xf32>
    %224 = arith.addf %223, %222 : vector<2x32xf32>
    %225 = arith.divf %223, %224 : vector<2x32xf32>
    %226 = vector.extract_strided_slice %213 {offsets = [0, 64], sizes = [2, 32], strides = [1, 1]} : vector<2x128xf32> to vector<2x32xf32>
    %227 = math.tanh %226 : vector<2x32xf32>
    %228 = vector.extract_strided_slice %213 {offsets = [0, 96], sizes = [2, 32], strides = [1, 1]} : vector<2x128xf32> to vector<2x32xf32>
    %229 = arith.negf %228 : vector<2x32xf32>
    %230 = math.exp %229 : vector<2x32xf32>
    %cst_68 = arith.constant 1.000000e+00 : f32
    %231 = vector.broadcast %cst_68 : f32 to vector<2x32xf32>
    %232 = arith.addf %231, %230 : vector<2x32xf32>
    %233 = arith.divf %231, %232 : vector<2x32xf32>
    %234 = arith.mulf %225, %204 : vector<2x32xf32>
    %235 = arith.mulf %219, %227 : vector<2x32xf32>
    %236 = arith.addf %234, %235 : vector<2x32xf32>
    %237 = math.tanh %236 : vector<2x32xf32>
    %238 = arith.mulf %233, %237 : vector<2x32xf32>
    %c6_69 = arith.constant 6 : index
    %c0_70 = arith.constant 0 : index
    %c0_71 = arith.constant 0 : index
    %239 = vector.load %arg16[%c6_69, %c0_70, %c0_71] : memref<8x2x32xf32, #tpu.memory_space<vmem>>, vector<1x2x32xf32>
    %240 = vector.shape_cast %239 : vector<1x2x32xf32> to vector<2x32xf32>
    %241 = vector.shape_cast %238 : vector<2x32xf32> to vector<1x2x32xf32>
    tpu.vector_store %arg16[%c6_69, %c0_70, %c0_71], %241 {strides = array<i32>} : memref<8x2x32xf32, #tpu.memory_space<vmem>>, vector<1x2x32xf32>,
    %c14 = arith.constant 14 : index
    %c0_72 = arith.constant 0 : index
    %242 = vector.load %arg15[%c14, %c0_72] : memref<16x128xf32, #tpu.memory_space<vmem>>, vector<2x128xf32>
    %243 = arith.truncf %238 : vector<2x32xf32> to vector<2x32xbf16>
    %cst_73 = arith.constant dense<0.000000e+00> : vector<2x128xf32>
    %244 = tpu.matmul %243, %15, %cst_73 {dimension_numbers = #tpu.dot_dimension_numbers<[1], [0], [0], [1], [0, 0, 1, 1], [], []>} : vector<2x32xbf16>, vector<32x128xbf16>, vector<2x128xf32> -> vector<2x128xf32>
    %245 = arith.addf %242, %244 : vector<2x128xf32>
    %246 = vector.extract_strided_slice %245 {offsets = [0, 0], sizes = [2, 32], strides = [1, 1]} : vector<2x128xf32> to vector<2x32xf32>
    %247 = arith.negf %246 : vector<2x32xf32>
    %248 = math.exp %247 : vector<2x32xf32>
    %cst_74 = arith.constant 1.000000e+00 : f32
    %249 = vector.broadcast %cst_74 : f32 to vector<2x32xf32>
    %250 = arith.addf %249, %248 : vector<2x32xf32>
    %251 = arith.divf %249, %250 : vector<2x32xf32>
    %252 = vector.extract_strided_slice %245 {offsets = [0, 32], sizes = [2, 32], strides = [1, 1]} : vector<2x128xf32> to vector<2x32xf32>
    %253 = arith.negf %252 : vector<2x32xf32>
    %254 = math.exp %253 : vector<2x32xf32>
    %cst_75 = arith.constant 1.000000e+00 : f32
    %255 = vector.broadcast %cst_75 : f32 to vector<2x32xf32>
    %256 = arith.addf %255, %254 : vector<2x32xf32>
    %257 = arith.divf %255, %256 : vector<2x32xf32>
    %258 = vector.extract_strided_slice %245 {offsets = [0, 64], sizes = [2, 32], strides = [1, 1]} : vector<2x128xf32> to vector<2x32xf32>
    %259 = math.tanh %258 : vector<2x32xf32>
    %260 = vector.extract_strided_slice %245 {offsets = [0, 96], sizes = [2, 32], strides = [1, 1]} : vector<2x128xf32> to vector<2x32xf32>
    %261 = arith.negf %260 : vector<2x32xf32>
    %262 = math.exp %261 : vector<2x32xf32>
    %cst_76 = arith.constant 1.000000e+00 : f32
    %263 = vector.broadcast %cst_76 : f32 to vector<2x32xf32>
    %264 = arith.addf %263, %262 : vector<2x32xf32>
    %265 = arith.divf %263, %264 : vector<2x32xf32>
    %266 = arith.mulf %257, %236 : vector<2x32xf32>
    %267 = arith.mulf %251, %259 : vector<2x32xf32>
    %268 = arith.addf %266, %267 : vector<2x32xf32>
    %269 = math.tanh %268 : vector<2x32xf32>
    %270 = arith.mulf %265, %269 : vector<2x32xf32>
    %c7 = arith.constant 7 : index
    %c0_77 = arith.constant 0 : index
    %c0_78 = arith.constant 0 : index
    %271 = vector.load %arg16[%c7, %c0_77, %c0_78] : memref<8x2x32xf32, #tpu.memory_space<vmem>>, vector<1x2x32xf32>
    %272 = vector.shape_cast %271 : vector<1x2x32xf32> to vector<2x32xf32>
    %273 = vector.shape_cast %270 : vector<2x32xf32> to vector<1x2x32xf32>
    tpu.vector_store %arg16[%c7, %c0_77, %c0_78], %273 {strides = array<i32>} : memref<8x2x32xf32, #tpu.memory_space<vmem>>, vector<1x2x32xf32>,
    %c0_79 = arith.constant 0 : index
    %c0_80 = arith.constant 0 : index
    %274 = vector.load %arg13[%c0_79, %c0_80] : memref<2x32xf32, #tpu.memory_space<vmem>>, vector<2x32xf32>
    tpu.vector_store %arg13[%c0_79, %c0_80], %270 {strides = array<i32>} : memref<2x32xf32, #tpu.memory_space<vmem>>, vector<2x32xf32>,
    %c0_81 = arith.constant 0 : index
    %c0_82 = arith.constant 0 : index
    %275 = vector.load %arg14[%c0_81, %c0_82] : memref<2x32xf32, #tpu.memory_space<vmem>>, vector<2x32xf32>
    tpu.vector_store %arg14[%c0_81, %c0_82], %268 {strides = array<i32>} : memref<2x32xf32, #tpu.memory_space<vmem>>, vector<2x32xf32>,
    %c0_83 = arith.constant 0 : index
    %c0_84 = arith.constant 0 : index
    %276 = vector.load %arg11[%c0_83, %c0_84] : memref<2x32xf32, #tpu.memory_space<vmem>>, vector<2x32xf32>
    tpu.vector_store %arg11[%c0_83, %c0_84], %270 {strides = array<i32>} : memref<2x32xf32, #tpu.memory_space<vmem>>, vector<2x32xf32>,
    %c0_85 = arith.constant 0 : index
    %c0_86 = arith.constant 0 : index
    %277 = vector.load %arg12[%c0_85, %c0_86] : memref<2x32xf32, #tpu.memory_space<vmem>>, vector<2x32xf32>
    tpu.vector_store %arg12[%c0_85, %c0_86], %268 {strides = array<i32>} : memref<2x32xf32, #tpu.memory_space<vmem>>, vector<2x32xf32>,
    %c2_i32 = arith.constant 2 : i32
    %278 = arith.cmpi eq, %arg0, %c2_i32 : i32
    %279 = arith.extui %278 : i1 to i32
    %c0_i32_87 = arith.constant 0 : i32
    %280 = arith.cmpi ne, %279, %c0_i32_87 : i32
    scf.if %280 {
      %c0_88 = arith.constant 0 : index
      %c0_89 = arith.constant 0 : index
      %c0_90 = arith.constant 0 : index
      %281 = vector.load %arg16[%c0_88, %c0_89, %c0_90] : memref<8x2x32xf32, #tpu.memory_space<vmem>>, vector<8x2x32xf32>
      %282 = vector.extract_strided_slice %281 {offsets = [0, 0, 0], sizes = [8, 1, 32], strides = [1, 1, 1]} : vector<8x2x32xf32> to vector<8x1x32xf32>
      %283 = vector.shape_cast %282 : vector<8x1x32xf32> to vector<8x32xf32>
      %284 = vector.extract_strided_slice %281 {offsets = [0, 1, 0], sizes = [8, 1, 32], strides = [1, 1, 1]} : vector<8x2x32xf32> to vector<8x1x32xf32>
      %285 = vector.shape_cast %284 : vector<8x1x32xf32> to vector<8x32xf32>
      %286 = tpu.concatenate %283, %285 in 0 : vector<8x32xf32>, vector<8x32xf32> -> vector<16x32xf32>
      %287 = arith.truncf %286 : vector<16x32xf32> to vector<16x32xbf16>
      %c0_91 = arith.constant 0 : index
      %c0_92 = arith.constant 0 : index
      %288 = vector.load %arg8[%c0_91, %c0_92] : memref<32x64xbf16, #tpu.memory_space<vmem>>, vector<32x64xbf16>
      %cst_93 = arith.constant dense<0.000000e+00> : vector<16x64xf32>
      %289 = tpu.matmul %287, %288, %cst_93 {dimension_numbers = #tpu.dot_dimension_numbers<[1], [0], [0], [1], [0, 0, 1, 1], [], []>} : vector<16x32xbf16>, vector<32x64xbf16>, vector<16x64xf32> -> vector<16x64xf32>
      %c0_94 = arith.constant 0 : index
      %c0_95 = arith.constant 0 : index
      %290 = vector.load %arg9[%c0_94, %c0_95] : memref<1x64xf32, #tpu.memory_space<vmem>>, vector<1x64xf32>
      %291 = vector.broadcast %290 : vector<1x64xf32> to vector<16x64xf32>
      %292 = arith.addf %289, %291 : vector<16x64xf32>
      %293 = vector.extract_strided_slice %292 {offsets = [0, 0], sizes = [8, 64], strides = [1, 1]} : vector<16x64xf32> to vector<8x64xf32>
      %c0_96 = arith.constant 0 : index
      %c0_97 = arith.constant 0 : index
      %c0_98 = arith.constant 0 : index
      %294 = vector.load %arg10[%c0_96, %c0_97, %c0_98] : memref<2x8x64xf32, #tpu.memory_space<vmem>>, vector<1x8x64xf32>
      %295 = vector.shape_cast %294 : vector<1x8x64xf32> to vector<8x64xf32>
      %296 = vector.shape_cast %293 : vector<8x64xf32> to vector<1x8x64xf32>
      tpu.vector_store %arg10[%c0_96, %c0_97, %c0_98], %296 {strides = array<i32>} : memref<2x8x64xf32, #tpu.memory_space<vmem>>, vector<1x8x64xf32>,
      %297 = vector.extract_strided_slice %292 {offsets = [8, 0], sizes = [8, 64], strides = [1, 1]} : vector<16x64xf32> to vector<8x64xf32>
      %c1_99 = arith.constant 1 : index
      %c0_100 = arith.constant 0 : index
      %c0_101 = arith.constant 0 : index
      %298 = vector.load %arg10[%c1_99, %c0_100, %c0_101] : memref<2x8x64xf32, #tpu.memory_space<vmem>>, vector<1x8x64xf32>
      %299 = vector.shape_cast %298 : vector<1x8x64xf32> to vector<8x64xf32>
      %300 = vector.shape_cast %297 : vector<8x64xf32> to vector<1x8x64xf32>
      tpu.vector_store %arg10[%c1_99, %c0_100, %c0_101], %300 {strides = array<i32>} : memref<2x8x64xf32, #tpu.memory_space<vmem>>, vector<1x8x64xf32>,
    } else {
    }
    return
  }
  func.func @transform_0(%arg0: i32, %arg1: i32) -> (i32, i32) {
    %c0_i32 = arith.constant 0 : i32
    %c0_i32_0 = arith.constant 0 : i32
    return %arg1, %c0_i32 : i32, i32
  }
  func.func @transform_1(%arg0: i32, %arg1: i32) -> (i32, i32, i32) {
    %c0_i32 = arith.constant 0 : i32
    %c0_i32_0 = arith.constant 0 : i32
    %c0_i32_1 = arith.constant 0 : i32
    return %arg0, %c0_i32, %c0_i32_0 : i32, i32, i32
  }
  func.func @transform_2(%arg0: i32, %arg1: i32) -> (i32, i32, i32) {
    %c0_i32 = arith.constant 0 : i32
    %c0_i32_0 = arith.constant 0 : i32
    %c0_i32_1 = arith.constant 0 : i32
    return %arg0, %c0_i32, %c0_i32_0 : i32, i32, i32
  }
  func.func @transform_3(%arg0: i32, %arg1: i32) -> (i32, i32, i32) {
    %c0_i32 = arith.constant 0 : i32
    %c0_i32_0 = arith.constant 0 : i32
    %c0_i32_1 = arith.constant 0 : i32
    return %arg0, %c0_i32, %c0_i32_0 : i32, i32, i32
  }
  func.func @transform_4(%arg0: i32, %arg1: i32) -> (i32, i32) {
    %c0_i32 = arith.constant 0 : i32
    %c0_i32_0 = arith.constant 0 : i32
    %c0_i32_1 = arith.constant 0 : i32
    return %c0_i32, %c0_i32_0 : i32, i32
  }
  func.func @transform_5(%arg0: i32, %arg1: i32) -> (i32, i32) {
    %c0_i32 = arith.constant 0 : i32
    %c0_i32_0 = arith.constant 0 : i32
    %c0_i32_1 = arith.constant 0 : i32
    return %c0_i32, %c0_i32_0 : i32, i32
  }
  func.func @transform_6(%arg0: i32, %arg1: i32) -> (i32, i32) {
    %c0_i32 = arith.constant 0 : i32
    %c0_i32_0 = arith.constant 0 : i32
    %c0_i32_1 = arith.constant 0 : i32
    return %c0_i32, %c0_i32_0 : i32, i32
  }
  func.func @transform_7(%arg0: i32, %arg1: i32) -> (i32, i32) {
    %c0_i32 = arith.constant 0 : i32
    %c0_i32_0 = arith.constant 0 : i32
    %c0_i32_1 = arith.constant 0 : i32
    return %c0_i32, %c0_i32_0 : i32, i32
  }
  func.func @transform_8(%arg0: i32, %arg1: i32) -> (i32, i32, i32) {
    %c0_i32 = arith.constant 0 : i32
    %c0_i32_0 = arith.constant 0 : i32
    %c0_i32_1 = arith.constant 0 : i32
    return %c0_i32, %arg1, %c0_i32_0 : i32, i32, i32
  }
  func.func @transform_9(%arg0: i32, %arg1: i32) -> (i32, i32) {
    %c0_i32 = arith.constant 0 : i32
    %c0_i32_0 = arith.constant 0 : i32
    %c0_i32_1 = arith.constant 0 : i32
    return %c0_i32, %c0_i32_0 : i32, i32
  }
  func.func @transform_10(%arg0: i32, %arg1: i32) -> (i32, i32) {
    %c0_i32 = arith.constant 0 : i32
    %c0_i32_0 = arith.constant 0 : i32
    %c0_i32_1 = arith.constant 0 : i32
    return %c0_i32, %c0_i32_0 : i32, i32
  }
}

</mosaic_0001>

<bundles_post_ra>
// kernel: tpu_custom_call.1
= control target key start
LH: loop header
LB: loop body
LE: loop exit
PB: predicated region body
PF: predicated region fallthrough
CT: control target
= control target key end

     0   :  { %s2702_s0 = inlined_call_operand.hbm [shape: bf16[16,32], index: 0, kind: input, shape index: {}]   ;;  %s2703_s1 = inlined_call_operand.hbm [shape: bf16[3,32,128], index: 1, kind: input, shape index: {}]   ;;  %s2704_s2 = inlined_call_operand.hbm [shape: bf16[3,32,128], index: 2, kind: input, shape index: {}]   ;;  %s2705_s3 = inlined_call_operand.vmem [shape: f32[3,1,128], index: 3, kind: input, shape index: {}]   ;;  %s2706_s4 = inlined_call_operand.vmem [shape: f32[2,32], index: 4, kind: input, shape index: {}]   ;;  %s2707_s5 = inlined_call_operand.hbm [shape: f32[2,32], index: 5, kind: input, shape index: {}]   ;;  %s2708_s6 = inlined_call_operand.vmem [shape: bf16[32,64], index: 6, kind: input, shape index: {}]   ;;  %s2709_s7 = inlined_call_operand.vmem [shape: f32[1,64], index: 7, kind: input, shape index: {}]   ;;  %s2710_s8 = inlined_call_operand.hbm [shape: f32[2,8,64], index: 8, kind: output, shape index: {0}]   ;;  %s2711_s9 = inlined_call_operand.hbm [shape: f32[2,32], index: 9, kind: output, shape index: {1}]   ;;  %s2712_s10 = inlined_call_operand.hbm [shape: f32[2,32], index: 10, kind: output, shape index: {2}]  }
   0x1   :  { %2722 = sst [smem:[#allocation26_spill]] %s2703_s1 }
   0x2   :  { %2723 = sst [smem:[#allocation27_spill]] %s2704_s2 }
   0x3   :  { %16 = vsyncpa [#allocation7], 0 }
   0x4   :  { %17 = vsyncpa [#allocation10], 0 }
   0x5   :  { %19 = vsyncpa [#allocation10 + $0x1], 0 }
   0x6   :  { %20 = vsyncpa [#allocation13], 0 }
   0x7   :  { %21 = vsyncpa [#allocation8], 0 }
   0x8   :  { %22 = vsyncpa [#allocation16], 0  ;;  %s2197_s13 = smov 0   ;;  %s2199_s14 = smov 0  }
   0x9   :  { %s2201_s15 = smov 0   ;;  %s2203_s16 = smov 0  }
   0xa   :  { %s2205_s17 = smov 0   ;;  %s2207_s18 = smov 0  }
   0xb LB: > { %2724 = sst [smem:[#allocation23_spill]] %s2118_s17  ;;  %s40_s19 = sadd.s32 1, %s2118_s17  ;;  %s2122_s18 = sphi %s2207_s18, %s28_s18   ;;  %s2118_s17 = sphi %s2205_s17, %s2744_s17   ;;  %s2114_s16 = sphi %s2203_s16, %s2743_s16   ;;  %s2110_s15 = sphi %s2201_s15, %s2747_s15   ;;  %s2106_s14 = sphi %s2199_s14, %s2746_s14   ;;  %s2102_s13 = sphi %s2197_s13, %s2745_s13  }
   0xc   : > { %s73_s20 = sadd.s32 1, %s2110_s15  ;;  %p42_p0 = scmp.ge.s32.totalorder %s40_s19, 3 }
   0xd   : > { %p80_p1 = scmp.ne.s32.totalorder %s2110_s15, %s2106_s14  ;;  %p81_p2 = scmp.eq.s32.totalorder %s2122_s18, 0 }
   0xe   : > { %s2749_s19 = smov (%p42_p0, %s40_s19), 0  ;;  %p1718_p5 = scmp.lt.s32.totalorder %s2122_s18, 3 }
   0xf   : > { %2725 = sst [smem:[#allocation24_spill]] %s2749_s19  ;;  %p2234_p3 = por %p81_p2, %p80_p1 }
  0x10   : > { %s70_s22 = ssub.s32 %s2118_s17, %s2749_s19  ;;  %s350_s23 = sand.u32 1, %s2122_s18  }
  0x11   : > { %p71_p4 = scmp.eq.s32.totalorder %s70_s22, 0  ;;  %s352_s24 = sand.u32 1, %s2110_s15  }
  0x12   : > { %s2246_s26 = sshll.u32 %s352_s24, 4  ;;  %s1565_s27 = sshll.u32 %s2118_s17, 8 }
  0x13   : > { %s2244_s25 = scalar_select %p71_p4, %s2110_s15, %s73_s20  }
  0x14   : > { %s2728_s1 = sld [smem:[#allocation26_spill]]  ;;  %s354_s11 = scalar_lea.vmem [#allocation9], %s2246_s26 }
  0x15   : > { %2727 = sst [smem:[#allocation25_spill]] %s2244_s25  ;;  %s361_s12 = sshll.u32 %s354_s11, 4  ;;  %s2255_s12 = int_to_ptr.vmem [resolvable:$true] %s361_s12 }
  0x16   : > { %p2259_p6 = pnand %p1718_p5, %p2234_p3  ;;  %s2730_s2 = sld [smem:[#allocation27_spill]] }
  0x17   : > { %s2268_s29 = scalar_lea.sflag [#allocation10], %s350_s23 }
  0x18   : > { %p1864_p8 = pneg %p2259_p6 }
  0x1a   : > { %s2252_s30 = scalar_lea.hbm %s2728_s1, %s1565_s27  ;;  %s1867_s17 = scalar_lea.hbm %s2728_s1, 768 }
  0x1b   : > { %s1862_s19 = scalar_lea.hbm %s2252_s30, 256  ;;  %p1868_p11 = scmp.lt.u32.totalorder %s2252_s30, %s2728_s1 }
  0x1c   : > { %s2266_s28 = scalar_lea.hbm %s2730_s2, %s1565_s27  ;;  %p1863_p7 = scmp.ne.s32.totalorder %s2252_s30, %s1862_s19 }
  0x1d   : > { %p1869_p12 = scmp.lt.u32.totalorder %s1867_s17, %s1862_s19  ;;  %p1871_p0 = scmp.lt.u32.totalorder %s1862_s19, %s2252_s30 }
  0x1e   : > { %p1865_p9 = pnand %p1864_p8, %p1863_p7 }
  0x1f   : > { %p1870_p13 = por %p1869_p12, %p1868_p11 }
  0x20   : > { %p1866_p10 = pneg %p1865_p9 }
  0x21   : > { %p1872_p1 = por %p1871_p0, %p1870_p13 }
  0x23   : > { %p1873_p2 = pnand %p1872_p1, %p1866_p10 }
  0x25   : > { %1876 = shalt.err (!%p1873_p2)
}
  0x26   : > { %s1877_s23 = scalar_lea.vmem %s2255_s12, 256  ;;  %s2124_s27 = smov [#allocation9]  }
  0x27   : > { %p1878_p3 = scmp.ne.s32.totalorder %s2255_s12, %s1877_s23  ;;  %s1882_s24 = sshll.u32 %s2124_s27, 4  ;;  %s1883_s24 = int_to_ptr.vmem [resolvable:$false] %s1882_s24 }
  0x28   : > { %s1884_s25 = scalar_lea.vmem %s1883_s24, 512  ;;  %p1885_p7 = scmp.lt.s32.totalorder %s2255_s12, %s1883_s24 }
  0x29   : > { %p1880_p4 = pnand %p1878_p3, %p1864_p8  ;;  %p1886_p9 = scmp.lt.s32.totalorder %s1884_s25, %s1877_s23 }
  0x2b   : > { %p1881_p5 = pneg %p1880_p4  ;;  %p1887_p11 = por %p1886_p9, %p1885_p7 }
  0x2d   : > { %p1888_p12 = pnand %p1887_p11, %p1881_p5 }
  0x2f   : > { %1891 = shalt.err (!%p1888_p12)
}
  0x30   : > { %s2715_s17 = smov 64   ;;  %s2717_s19 = smov 4  }
  0x31   : > { %1712 = dma.hbm_to_vmem [thread:$0]  (!%p2259_p6), %s2252_s30, 256, %s2255_s12, %s2268_s29, %s2715_s17, %s2715_s17, %s2717_s19  }
  0x32   : > { %s375_s21 = scalar_lea.vmem [#allocation11], %s2246_s26  ;;  %s2301_s22 = sadd.s32 4294967295, %s2122_s18  }
  0x33   : > { %s382_s11 = sshll.u32 %s375_s21, 4  ;;  %p86_p10 = scmp.ne.s32.totalorder %s2106_s14, %s2102_s13  ;;  %s2318_s11 = int_to_ptr.vmem [resolvable:$true] %s382_s11 }
  0x34   : > { %p2719_p13 = scmp.eq.s32.totalorder %s2301_s22, 0  ;;  %p1513_p0 = scmp.ge.s32.totalorder %s2122_s18, 1 }
  0x35   : > { %p301_p1 = scmp.lt.s32.totalorder %s2122_s18, 4  ;;  %s2127_s30 = smov [#allocation6]  }
  0x36   : > { %p2310_p2 = por %p2719_p13, %p86_p10  ;;  %s316_s12 = sshll.u32 %s2127_s30, 4  ;;  %s2322_s12 = int_to_ptr.vmem [resolvable:$true] %s316_s12 }
  0x37   : > { %p2314_p3 = pnand %p1513_p0, %p301_p1  ;;  %s2128_s13 = smov [#allocation12]  }
  0x38   : > { %s2731_s23 = scalar_select %p2310_p2, 1, 0 }
  0x39   : > { %s2732_s26 = scalar_select %p2314_p3, 1, 0 }
  0x3a   : > { %p1702_p4 = pneg %p2314_p3  ;;  %s333_s27 = sshll.u32 %s2128_s13, 4  ;;  %s2330_s27 = int_to_ptr.vmem [resolvable:$true] %s333_s27 }
  0x3b   : > { %s1892_s25 = scalar_lea.hbm %s2266_s28, 256  ;;  %s1897_s17 = scalar_lea.hbm %s2730_s2, 768 }
  0x3c   : > { %p2326_p5 = pnand %p1702_p4, %p2719_p13  ;;  %p1893_p7 = scmp.ne.s32.totalorder %s2266_s28, %s1892_s25 }
  0x3d   : > { %p1898_p12 = scmp.lt.u32.totalorder %s2266_s28, %s2730_s2  ;;  %p1899_p10 = scmp.lt.u32.totalorder %s1897_s17, %s1892_s25 }
  0x3e   : > { %p1895_p9 = pnand %p1893_p7, %p1864_p8  ;;  %p1901_p1 = scmp.lt.u32.totalorder %s1892_s25, %s2266_s28 }
  0x3f   : > { %p1900_p0 = por %p1899_p10, %p1898_p12 }
  0x40   : > { %p1896_p11 = pneg %p1895_p9 }
  0x41   : > { %p1902_p4 = por %p1901_p1, %p1900_p0 }
  0x43   : > { %p1903_p13 = pnand %p1902_p4, %p1896_p11 }
  0x45   : > { %1906 = shalt.err (!%p1903_p13)
}
  0x46   : > { %s1907_s13 = scalar_lea.vmem %s2318_s11, 256  ;;  %s2129_s21 = smov [#allocation11]  }
  0x47   : > { %p1908_p7 = scmp.ne.s32.totalorder %s2318_s11, %s1907_s13  ;;  %s1912_s30 = sshll.u32 %s2129_s21, 4  ;;  %s1913_s30 = int_to_ptr.vmem [resolvable:$false] %s1912_s30 }
  0x48   : > { %s1914_s1 = scalar_lea.vmem %s1913_s30, 512  ;;  %p1915_p3 = scmp.lt.s32.totalorder %s2318_s11, %s1913_s30 }
  0x49   : > { %p1910_p9 = pnand %p1908_p7, %p1864_p8  ;;  %p1916_p12 = scmp.lt.s32.totalorder %s1914_s1, %s1907_s13 }
  0x4b   : > { %p1911_p2 = pneg %p1910_p9  ;;  %p1917_p10 = por %p1916_p12, %p1915_p3 }
  0x4d   : > { %p1918_p0 = pnand %p1917_p10, %p1911_p2 }
  0x4f   : > { %1921 = shalt.err (!%p1918_p0)
}
  0x50   : > { %s2734_s17 = smov 4   ;;  %s2735_s19 = smov 64  }
  0x51   : > { %1715 = dma.hbm_to_vmem [thread:$0]  (!%p2259_p6), %s2266_s28, 256, %s2318_s11, %s2268_s29, %s2735_s19, %s2735_s19, %s2734_s17  }
  0x52   : > { %s1922_s2 = scalar_lea.hbm %s2702_s0, 128  ;;  %p1924_p13 = pneg %p2326_p5 }
  0x53   : > { %p1923_p8 = scmp.ne.s32.totalorder %s2702_s0, %s1922_s2  ;;  %p1929_p11 = scmp.lt.u32.totalorder %s1922_s2, %s2702_s0 }
  0x55   : > { %p1925_p2 = pnand %p1924_p13, %p1923_p8 }
  0x57   : > { %p1926_p3 = pneg %p1925_p2 }
  0x59   : > { %p1931_p1 = pnand %p1929_p11, %p1926_p3 }
  0x5b   : > { %1934 = shalt.err (!%p1931_p1)
}
  0x5c   : > { %s1935_s28 = scalar_lea.vmem %s2322_s12, 128  ;;  %p1943_p9 = scmp.lt.s32.totalorder %s2322_s12, %s2322_s12 }
  0x5d   : > { %p1936_p6 = scmp.ne.s32.totalorder %s2322_s12, %s1935_s28  ;;  %p1944_p12 = scmp.lt.s32.totalorder %s1935_s28, %s1935_s28 }
  0x5f   : > { %p1938_p4 = pnand %p1936_p6, %p1924_p13  ;;  %p1945_p10 = por %p1944_p12, %p1943_p9 }
  0x61   : > { %p1939_p7 = pneg %p1938_p4 }
  0x63   : > { %p1946_p0 = pnand %p1945_p10, %p1939_p7 }
  0x65   : > { %1949 = shalt.err (!%p1946_p0)
}
  0x66   : > { %1705 = dma.hbm_to_vmem [thread:$0]  (!%p2326_p5), %s2702_s0, 128, %s2322_s12, [#allocation7], %s2735_s19, %s2735_s19, %s2734_s17  }
  0x67   : > { %s1950_s21 = scalar_lea.hbm %s2707_s5, 32 }
  0x68   : > { %p1951_p8 = scmp.ne.s32.totalorder %s2707_s5, %s1950_s21  ;;  %p1957_p11 = scmp.lt.u32.totalorder %s1950_s21, %s2707_s5 }
  0x6a   : > { %p1953_p2 = pnand %p1951_p8, %p1924_p13 }
  0x6c   : > { %p1954_p3 = pneg %p1953_p2 }
  0x6e   : > { %p1959_p1 = pnand %p1957_p11, %p1954_p3 }
  0x70   : > { %1962 = shalt.err (!%p1959_p1)
}
  0x71   : > { %s1963_s12 = scalar_lea.vmem %s2330_s27, 32  ;;  %p1971_p9 = scmp.lt.s32.totalorder %s2330_s27, %s2330_s27 }
  0x72   : > { %p1964_p6 = scmp.ne.s32.totalorder %s2330_s27, %s1963_s12  ;;  %p1972_p12 = scmp.lt.s32.totalorder %s1963_s12, %s1963_s12 }
  0x74   : > { %p1966_p4 = pnand %p1964_p6, %p1924_p13  ;;  %p1973_p10 = por %p1972_p12, %p1971_p9 }
  0x76   : > { %p1967_p7 = pneg %p1966_p4 }
  0x78   : > { %p1974_p0 = pnand %p1973_p10, %p1967_p7 }
  0x7a   : > { %1977 = shalt.err (!%p1974_p0)
}
  0x7b   : > { %1708 = dma.hbm_to_vmem [thread:$0]  (!%p2326_p5), %s2707_s5, 32, %s2330_s27, [#allocation13]  }
  0x7c   : > { %p2736_p8 = scmp.ne.s32.totalorder %s2732_s26, 0 }
  0x7d   : > { %p2737_p2 = scmp.eq.s32.totalorder (!%p2736_p8), %s2301_s22, 0 }
  0x7e   : > { %400 = sbr.rel (%p2736_p8) target bundleno = 6105 (0x17d9), region = 52 }
  0x85   : > { %2081 = dma.done.wait (%p2737_p2), [#allocation7], 128   ;;  %p2738_p13 = pmov %p2737_p2 }
  0x86   : > { %s406_s28 = sand.u32 1, %s2301_s22   ;;  %s408_s2 = sand.u32 1, %s2106_s14  }
  0x87   : > { %2083 = vsyncadd (%p2738_p13), [#allocation7], 4294967168  ;;  %s2422_s24 = sshll.u32 %s408_s2, 4  ;;  %s407_s29 = scalar_lea.sflag [#allocation10], %s406_s28 }
  0x88   : > { %s410_s11 = scalar_lea.vmem [#allocation9], %s2422_s24  ;;  %p2739_p5 = scmp.ne.s32.totalorder %s2731_s23, 0 }
  0x8a   : > { %2085 = dma.done.wait (%p2739_p5), %s407_s29, 512  }
  0x8b   : > { %2087 = vsyncadd (%p2739_p5), %s407_s29, 4294966784  ;;  %s419_s26 = scalar_lea.vmem [#allocation11], %s2422_s24  ;;  %p2740_p3 = pmov %p2737_p2 }
  0x8c   : > { %p2741_p11 = pmov %p2737_p2 }
  0x8d   : > { %2089 = dma.done.wait (%p2740_p3), [#allocation13], 32  }
  0x8e   : > { %2091 = vsyncadd (%p2741_p11), [#allocation13], 4294967264  ;;  %p464_p1 = scmp.lt.s32.totalorder %s2114_s16, 2  ;;  %p468_p6 = scmp.eq.s32.totalorder %s2114_s16, 0 }
  0x8f   : > { %v474_v0 = vld [vmem:[%s2706_s4] sm:$0x3] (%p468_p6)  ;;  %vm475_vm0 = vcmask (%p468_p6), 254976   ;;  %v477_v1 = vld [vmem:[#allocation12] sm:$0x3] (%p468_p6) }
  0x90   : > { %s2437_s27 = scalar_select %p464_p1, %s2114_s16, 2 }
  0x91   : > { %473 = sbr.rel (!%p468_p6) target bundleno = 152 (0x98), region = 72  ;;  %476 = vst.msk [vmem:[#allocation2] sm:$0x3] (%p468_p6), %vm475_vm0, %v474_v0  ;;  %478 = vst.msk [vmem:[#allocation3] sm:$0x3] (%p468_p6), %vm475_vm0, %v477_v1 }
  0x92   : > { %s466_s23 = scalar_lea.vmem %s2705_s3, %s2437_s27 }
  0x98 PF: > { %v1791_v2 = vld [vmem:[%s410_s11] sm:$0xff]   ;;  %v2130_v3 = vmov 0.0   ;;  %v1792_v4 = vld [vmem:[%s410_s11 + $0x8] sm:$0xff]   ;;  %vm2131_vm1 = vmmov 0   ;;  %vm509_vm2 = vcmask 261120   ;;  %s2132_s12 = smov 64  }
  0x99   : > { %1598 = vmatprep.subr.bf16.mxu0 %v2130_v3  ;;  %1606 = vmatprep.subr.bf16.mxu1 %v2130_v3  ;;  %v2451_v5 = vld [vmem:[%s419_s26] sm:$0xff]   ;;  %v1793_v6 = vld [vmem:[#allocation6] sm:$0xff]   ;;  %s2133_s17 = smov 32   ;;  %vm652_vm3 = vcmask 254976   ;;  %s2134_s19 = smov 96  }
  0x9a   : > { %1599 = vmatpush3.bf16.msra.mxu0 %v1791_v2  ;;  %1602 = vmatprep.mubr.msk.bf16.mxu0 %vm2131_vm1, %v2130_v3  ;;  %v2456_v7 = vld [vmem:[%s419_s26 + $0x8] sm:$0xff]   ;;  %v560_v8 = vld [vmem:[#allocation2] sm:$0x3]  ;;  %v1529_v10 = vld [vmem:[%s466_s23] ss:$0 sm:$0xff]  ;;  %p1552_p4 = scmp.ne.s32.totalorder %s2114_s16, 2 }
  0x9b   : > { %1600 = vmatprep.subr.bf16.mxu0 %v2130_v3  ;;  %1610 = vmatprep.mubr.msk.bf16.mxu1 %vm2131_vm1, %v2130_v3  ;;  %v563_v9 = vpack.c.bf16 %v560_v8, %v560_v8  ;;  %v561_v24 = vld [vmem:[#allocation3] sm:$0x3]  ;;  %vm2136_vm4 = vmmov (!%p1552_p4), 0   ;;  %vm1236_vm5 = vcmask (!%p1552_p4), 1041409   ;;  %vm1239_vm6 = vcmask (!%p1552_p4), 1042434  }
  0x9c   : > { %1607 = vmatpush3.bf16.msra.mxu1 %v2451_v5  ;;  %vm1242_vm7 = vcmask (!%p1552_p4), 1043459   ;;  %vm1245_vm8 = vcmask (!%p1552_p4), 1044484   ;;  %vm1248_vm9 = vcmask (!%p1552_p4), 1045509   ;;  %vm1251_vm10 = vcmask (!%p1552_p4), 1046534  }
  0x9d   : > { %1608 = vmatprep.subr.bf16.mxu1 %v2130_v3  ;;  %vm1254_vm11 = vcmask (!%p1552_p4), 1047559   ;;  %vm1340_vm12 = vcmask (!%p1552_p4), 523264  }
  0x9e   : > { %1601 = vmatpush3.bf16.msra.mxu0 %v1792_v4 }
  0x9f   : > { %1614 = vmatprep.subr.bf16.mxu0 %v2130_v3 }
  0xa0   : > { %1609 = vmatpush3.bf16.msra.mxu1 %v2456_v7 }
  0xa1   : > { %1603 = vmatmul.mubr.msk.bf16.vlgmr.msra.gmra.mrb[0].mxu0 %vm509_vm2, %v1793_v6  ;;  %1622 = vmatprep.subr.bf16.mxu1 %v2130_v3 }
  0xa2   : > { %1615 = vmatpush3.bf16.msra.mxu0 %v2451_v5  ;;  %1618 = vmatprep.mubr.msk.bf16.mxu0 %vm2131_vm1, %v2130_v3 }
  0xa3   : > { %1616 = vmatprep.subr.bf16.mxu0 %v2130_v3  ;;  %1611 = vmatmul.mubr.msk.bf16.vlgmr.msra.gmra.mrb[0].mxu1 %vm509_vm2, %v563_v9 }
  0xa4   : > { %1623 = vmatpush3.bf16.msra.mxu1 %v2451_v5  ;;  %1626 = vmatprep.mubr.msk.bf16.mxu1 %vm2131_vm1, %v2130_v3 }
  0xa5   : > { %1624 = vmatprep.subr.bf16.mxu1 %v2130_v3 }
  0xa6   : > { %1617 = vmatpush3.bf16.msra.mxu0 %v2456_v7 }
  0xa7   : > { %1630 = vmatprep.subr.bf16.mxu0 %v2130_v3 }
  0xa8   : > { %1625 = vmatpush3.bf16.msra.mxu1 %v2456_v7 }
  0xa9   : > { %1638 = vmatprep.subr.bf16.mxu1 %v2130_v3 }
 0x174   : > { %v547_v11 = vpop.f32.mrb[0].mxu0 }
 0x175   : > { %v548_v12 = vadd.f32 %v1529_v10, %v547_v11  ;;  %v1604_v13 = vpop.f32.mrb[1].mxu0 }
 0x176   : > { %v550_v14 = vpop.f32.mrb[2].mxu0  ;;  %v613_v17 = vpop.f32.mrb[0].mxu1 }
 0x177   : > { %554 = vst [vmem:[#allocation4] sm:$0xff] %v548_v12  ;;  %v551_v15 = vadd.f32 %v1529_v10, %v550_v14  ;;  %v1605_v16 = vpop.f32.mrb[3].mxu0  ;;  %v1612_v18 = vpop.f32.mrb[1].mxu1 }
 0x178   : > { %v616_v19 = vpop.f32.mrb[2].mxu1 }
 0x179   : > { %555 = vst [vmem:[#allocation4 + $0x8] sm:$0xff] %v551_v15  ;;  %v1613_v20 = vpop.f32.mrb[3].mxu1 }
 0x17e   : > { %v562_v21 = vld [vmem:[#allocation4] sm:$0x3]  ;;  %v654_v40 = vld [vmem:[#allocation4 + $0x2] sm:$0x3]  ;;  %v733_v61 = vld [vmem:[#allocation4 + $0x4] sm:$0x3] }
 0x17f   : > { %v619_v22 = vadd.f32 %v613_v17, %v562_v21  ;;  %v812_v21 = vld [vmem:[#allocation4 + $0x6] sm:$0x3] }
 0x181   : > { %1796 = vtanh.f32 %v619_v22  ;;  %v1537_v25 = vmul.f32 -1.442695, %v619_v22 }
 0x183   : > { %1798 = vpow2.f32 %v1537_v25 }
 0x18b   : > { %v1797_v23 = vpop.eup %1796 }
 0x18c   : > { %633 = vrot.lane.b32.xlu0 %v1797_v23, %s2132_s12 }
 0x18d   : > { %v1799_v26 = vpop.eup %1798 }
 0x18e   : > { %v623_v27 = vadd.f32 1.0, %v1799_v26 }
 0x190   : > { %628 = vrot.lane.b32.xlu0 %v561_v24, %s2133_s17  ;;  %1800 = vrcp.f32 %v623_v27 }
 0x19a   : > { %v1801_v28 = vpop.eup %1800 }
 0x1fe   : > { %v634_v29 = vpop.permute.xlu0 %633 }
 0x1ff   : > { %v636_v30 = vmul.f32 %v1801_v28, %v634_v29 }
 0x201   : > { %638 = vrot.lane.b32.xlu1 %v636_v30, %s2133_s17 }
 0x202   : > { %v629_v31 = vpop.permute.xlu0 %628 }
 0x203   : > { %v631_v32 = vmul.f32 %v1801_v28, %v629_v31 }
 0x273   : > { %v639_v33 = vpop.permute.xlu1 %638 }
 0x274   : > { %v641_v34 = vadd.f32 %v639_v33, %v631_v32 }
 0x276   : > { %1802 = vtanh.f32 %v641_v34 }
 0x280   : > { %v1803_v35 = vpop.eup %1802 }
 0x281   : > { %644 = vrot.lane.b32.xlu1 %v1803_v35, %s2132_s12 }
 0x2f3   : > { %v645_v36 = vpop.permute.xlu1 %644 }
 0x2f4   : > { %v2485_v37 = vmul.f32 %v1801_v28, %v645_v36 }
 0x2f6   : > { %v655_v38 = vpack.c.bf16 %v2485_v37, %v2485_v37 }
 0x2f8   : > { %657 = vrot.lane.b32.xlu0 %v655_v38, %s2133_s17 }
 0x36a   : > { %v658_v39 = vpop.permute.xlu0 %657 }
 0x36b   : > { %1619 = vmatmul.mubr.msk.bf16.vlgmr.msra.gmra.mrb[4].mxu0 %vm509_vm2, %v658_v39 }
 0x36c   : > { %1631 = vmatpush3.bf16.msra.mxu0 %v2451_v5  ;;  %1634 = vmatprep.mubr.msk.bf16.mxu0 %vm2131_vm1, %v2130_v3 }
 0x36d   : > { %1632 = vmatprep.subr.bf16.mxu0 %v2130_v3 }
 0x370   : > { %1633 = vmatpush3.bf16.msra.mxu0 %v2456_v7 }
 0x371   : > { %1646 = vmatprep.subr.bf16.mxu0 %v2130_v3 }
 0x43e   : > { %v696_v41 = vpop.f32.mrb[4].mxu0 }
 0x43f   : > { %v702_v42 = vadd.f32 %v696_v41, %v654_v40  ;;  %v1620_v43 = vpop.f32.mrb[5].mxu0 }
 0x440   : > { %v699_v44 = vpop.f32.mrb[6].mxu0  ;;  %v891_v43 = vld [vmem:[#allocation4 + $0x8] sm:$0x3] }
 0x441   : > { %1804 = vtanh.f32 %v702_v42  ;;  %v1621_v45 = vpop.f32.mrb[7].mxu0  ;;  %v1539_v47 = vmul.f32 -1.442695, %v702_v42 }
 0x443   : > { %1806 = vpow2.f32 %v1539_v47 }
 0x44b   : > { %v1805_v46 = vpop.eup %1804 }
 0x44c   : > { %712 = vrot.lane.b32.xlu1 %v1805_v46, %s2132_s12 }
 0x44d   : > { %v1807_v48 = vpop.eup %1806 }
 0x44e   : > { %v706_v49 = vadd.f32 1.0, %v1807_v48 }
 0x450   : > { %1808 = vrcp.f32 %v706_v49 }
 0x45a   : > { %v1809_v50 = vpop.eup %1808 }
 0x45b   : > { %v710_v53 = vmul.f32 %v1809_v50, %v641_v34 }
 0x4be   : > { %v713_v51 = vpop.permute.xlu1 %712 }
 0x4bf   : > { %v715_v52 = vmul.f32 %v1809_v50, %v713_v51 }
 0x4c1   : > { %717 = vrot.lane.b32.xlu0 %v715_v52, %s2133_s17 }
 0x533   : > { %v718_v54 = vpop.permute.xlu0 %717 }
 0x534   : > { %v720_v55 = vadd.f32 %v718_v54, %v710_v53 }
 0x536   : > { %1810 = vtanh.f32 %v720_v55 }
 0x540   : > { %v1811_v56 = vpop.eup %1810 }
 0x541   : > { %723 = vrot.lane.b32.xlu1 %v1811_v56, %s2132_s12 }
 0x5b3   : > { %v724_v57 = vpop.permute.xlu1 %723 }
 0x5b4   : > { %v2500_v58 = vmul.f32 %v1809_v50, %v724_v57 }
 0x5b6   : > { %v734_v59 = vpack.c.bf16 %v2500_v58, %v2500_v58 }
 0x5b8   : > { %736 = vrot.lane.b32.xlu0 %v734_v59, %s2133_s17 }
 0x62a   : > { %v737_v60 = vpop.permute.xlu0 %736 }
 0x62b   : > { %1627 = vmatmul.mubr.msk.bf16.vlgmr.msra.gmra.mrb[4].mxu1 %vm509_vm2, %v737_v60 }
 0x62c   : > { %1639 = vmatpush3.bf16.msra.mxu1 %v2451_v5  ;;  %1642 = vmatprep.mubr.msk.bf16.mxu1 %vm2131_vm1, %v2130_v3 }
 0x62d   : > { %1640 = vmatprep.subr.bf16.mxu1 %v2130_v3 }
 0x630   : > { %1641 = vmatpush3.bf16.msra.mxu1 %v2456_v7 }
 0x631   : > { %1654 = vmatprep.subr.bf16.mxu1 %v2130_v3 }
 0x6fe   : > { %v775_v62 = vpop.f32.mrb[4].mxu1 }
 0x6ff   : > { %v781_v63 = vadd.f32 %v775_v62, %v733_v61  ;;  %v1628_v0 = vpop.f32.mrb[5].mxu1 }
 0x700   : > { %v778_v1 = vpop.f32.mrb[6].mxu1 }
 0x701   : > { %1812 = vtanh.f32 %v781_v63  ;;  %v1629_v2 = vpop.f32.mrb[7].mxu1  ;;  %v1541_v6 = vmul.f32 -1.442695, %v781_v63  ;;  %v970_v1 = vld [vmem:[#allocation4 + $0xa] sm:$0x3] }
 0x703   : > { %1814 = vpow2.f32 %v1541_v6 }
 0x70b   : > { %v1813_v4 = vpop.eup %1812 }
 0x70c   : > { %791 = vrot.lane.b32.xlu1 %v1813_v4, %s2132_s12 }
 0x70d   : > { %v1815_v8 = vpop.eup %1814 }
 0x70e   : > { %v785_v9 = vadd.f32 1.0, %v1815_v8 }
 0x710   : > { %1816 = vrcp.f32 %v785_v9 }
 0x71a   : > { %v1817_v10 = vpop.eup %1816 }
 0x71b   : > { %v789_v13 = vmul.f32 %v1817_v10, %v720_v55 }
 0x77e   : > { %v792_v11 = vpop.permute.xlu1 %791 }
 0x77f   : > { %v794_v12 = vmul.f32 %v1817_v10, %v792_v11 }
 0x781   : > { %796 = vrot.lane.b32.xlu0 %v794_v12, %s2133_s17 }
 0x7f3   : > { %v797_v14 = vpop.permute.xlu0 %796 }
 0x7f4   : > { %v799_v15 = vadd.f32 %v797_v14, %v789_v13 }
 0x7f6   : > { %1818 = vtanh.f32 %v799_v15 }
 0x800   : > { %v1819_v16 = vpop.eup %1818 }
 0x801   : > { %802 = vrot.lane.b32.xlu1 %v1819_v16, %s2132_s12 }
 0x873   : > { %v803_v17 = vpop.permute.xlu1 %802 }
 0x874   : > { %v2515_v18 = vmul.f32 %v1817_v10, %v803_v17 }
 0x876   : > { %v813_v19 = vpack.c.bf16 %v2515_v18, %v2515_v18 }
 0x878   : > { %815 = vrot.lane.b32.xlu0 %v813_v19, %s2133_s17 }
 0x8ea   : > { %v816_v20 = vpop.permute.xlu0 %815 }
 0x8eb   : > { %1635 = vmatmul.mubr.msk.bf16.vlgmr.msra.gmra.mrb[8].mxu0 %vm509_vm2, %v816_v20 }
 0x8ec   : > { %1647 = vmatpush3.bf16.msra.mxu0 %v2451_v5  ;;  %1650 = vmatprep.mubr.msk.bf16.mxu0 %vm2131_vm1, %v2130_v3 }
 0x8ed   : > { %1648 = vmatprep.subr.bf16.mxu0 %v2130_v3 }
 0x8f0   : > { %1649 = vmatpush3.bf16.msra.mxu0 %v2456_v7 }
 0x8f1   : > { %1662 = vmatprep.subr.bf16.mxu0 %v2130_v3 }
 0x9be   : > { %v854_v22 = vpop.f32.mrb[8].mxu0 }
 0x9bf   : > { %v860_v23 = vadd.f32 %v854_v22, %v812_v21  ;;  %v1636_v24 = vpop.f32.mrb[9].mxu0 }
 0x9c0   : > { %v857_v25 = vpop.f32.mrb[10].mxu0 }
 0x9c1   : > { %1820 = vtanh.f32 %v860_v23  ;;  %v1637_v26 = vpop.f32.mrb[11].mxu0  ;;  %v1543_v28 = vmul.f32 -1.442695, %v860_v23  ;;  %v1049_v23 = vld [vmem:[#allocation4 + $0xc] sm:$0x3] }
 0x9c3   : > { %1822 = vpow2.f32 %v1543_v28 }
 0x9cb   : > { %v1821_v27 = vpop.eup %1820 }
 0x9cc   : > { %870 = vrot.lane.b32.xlu1 %v1821_v27, %s2132_s12 }
 0x9cd   : > { %v1823_v29 = vpop.eup %1822 }
 0x9ce   : > { %v864_v30 = vadd.f32 1.0, %v1823_v29 }
 0x9d0   : > { %1824 = vrcp.f32 %v864_v30 }
 0x9da   : > { %v1825_v31 = vpop.eup %1824 }
 0x9db   : > { %v868_v34 = vmul.f32 %v1825_v31, %v799_v15 }
 0xa3e   : > { %v871_v32 = vpop.permute.xlu1 %870 }
 0xa3f   : > { %v873_v33 = vmul.f32 %v1825_v31, %v871_v32 }
 0xa41   : > { %875 = vrot.lane.b32.xlu0 %v873_v33, %s2133_s17 }
 0xab3   : > { %v876_v35 = vpop.permute.xlu0 %875 }
 0xab4   : > { %v878_v36 = vadd.f32 %v876_v35, %v868_v34 }
 0xab6   : > { %1826 = vtanh.f32 %v878_v36 }
 0xac0   : > { %v1827_v38 = vpop.eup %1826 }
 0xac1   : > { %881 = vrot.lane.b32.xlu1 %v1827_v38, %s2132_s12 }
 0xb33   : > { %v882_v39 = vpop.permute.xlu1 %881 }
 0xb34   : > { %v2530_v40 = vmul.f32 %v1825_v31, %v882_v39 }
 0xb36   : > { %v892_v41 = vpack.c.bf16 %v2530_v40, %v2530_v40 }
 0xb38   : > { %894 = vrot.lane.b32.xlu0 %v892_v41, %s2133_s17 }
 0xbaa   : > { %v895_v42 = vpop.permute.xlu0 %894 }
 0xbab   : > { %1643 = vmatmul.mubr.msk.bf16.vlgmr.msra.gmra.mrb[8].mxu1 %vm509_vm2, %v895_v42 }
 0xbac   : > { %1655 = vmatpush3.bf16.msra.mxu1 %v2451_v5  ;;  %1658 = vmatprep.mubr.msk.bf16.mxu1 %vm2131_vm1, %v2130_v3 }
 0xbad   : > { %1656 = vmatprep.subr.bf16.mxu1 %v2130_v3 }
 0xbb0   : > { %1657 = vmatpush3.bf16.msra.mxu1 %v2456_v7 }
 0xc7e   : > { %v933_v44 = vpop.f32.mrb[8].mxu1 }
 0xc7f   : > { %v939_v45 = vadd.f32 %v933_v44, %v891_v43  ;;  %v1644_v46 = vpop.f32.mrb[9].mxu1 }
 0xc80   : > { %v936_v47 = vpop.f32.mrb[10].mxu1  ;;  %v1128_v46 = vld [vmem:[#allocation4 + $0xe] sm:$0x3] }
 0xc81   : > { %1828 = vtanh.f32 %v939_v45  ;;  %v1645_v48 = vpop.f32.mrb[11].mxu1  ;;  %v1545_v50 = vmul.f32 -1.442695, %v939_v45 }
 0xc83   : > { %1830 = vpow2.f32 %v1545_v50 }
 0xc8b   : > { %v1829_v49 = vpop.eup %1828 }
 0xc8c   : > { %949 = vrot.lane.b32.xlu1 %v1829_v49, %s2132_s12 }
 0xc8d   : > { %v1831_v51 = vpop.eup %1830 }
 0xc8e   : > { %v943_v52 = vadd.f32 1.0, %v1831_v51 }
 0xc90   : > { %1832 = vrcp.f32 %v943_v52 }
 0xc9a   : > { %v1833_v53 = vpop.eup %1832 }
 0xc9b   : > { %v947_v56 = vmul.f32 %v1833_v53, %v878_v36 }
 0xcfe   : > { %v950_v54 = vpop.permute.xlu1 %949 }
 0xcff   : > { %v952_v55 = vmul.f32 %v1833_v53, %v950_v54 }
 0xd01   : > { %954 = vrot.lane.b32.xlu0 %v952_v55, %s2133_s17 }
 0xd73   : > { %v955_v57 = vpop.permute.xlu0 %954 }
 0xd74   : > { %v957_v59 = vadd.f32 %v955_v57, %v947_v56 }
 0xd76   : > { %1834 = vtanh.f32 %v957_v59 }
 0xd80   : > { %v1835_v60 = vpop.eup %1834 }
 0xd81   : > { %960 = vrot.lane.b32.xlu1 %v1835_v60, %s2132_s12 }
 0xdf3   : > { %v961_v61 = vpop.permute.xlu1 %960 }
 0xdf4   : > { %v2544_v62 = vmul.f32 %v1833_v53, %v961_v61 }
 0xdf6   : > { %v971_v63 = vpack.c.bf16 %v2544_v62, %v2544_v62 }
 0xdf8   : > { %973 = vrot.lane.b32.xlu0 %v971_v63, %s2133_s17 }
 0xe6a   : > { %v974_v0 = vpop.permute.xlu0 %973 }
 0xe6b   : > { %1651 = vmatmul.mubr.msk.bf16.vlgmr.msra.gmra.mrb[12].mxu0 %vm509_vm2, %v974_v0 }
 0xe6c   : > { %1663 = vmatpush3.bf16.msra.mxu0 %v2451_v5  ;;  %1666 = vmatprep.mubr.msk.bf16.mxu0 %vm2131_vm1, %v2130_v3 }
 0xe6d   : > { %1664 = vmatprep.subr.bf16.mxu0 %v2130_v3 }
 0xe70   : > { %1665 = vmatpush3.bf16.msra.mxu0 %v2456_v7 }
 0xf3e   : > { %v1012_v2 = vpop.f32.mrb[12].mxu0 }
 0xf3f   : > { %v1018_v4 = vadd.f32 %v1012_v2, %v970_v1  ;;  %v1652_v6 = vpop.f32.mrb[13].mxu0 }
 0xf40   : > { %v1015_v8 = vpop.f32.mrb[14].mxu0 }
 0xf41   : > { %1836 = vtanh.f32 %v1018_v4  ;;  %v1653_v9 = vpop.f32.mrb[15].mxu0  ;;  %v1547_v11 = vmul.f32 -1.442695, %v1018_v4 }
 0xf43   : > { %1838 = vpow2.f32 %v1547_v11  ;;  %v2135_v11 = vmov (!%p1552_p4), 0.0  }
 0xf44   : > { %1670 = vmatprep.subr.bf16.mxu0 (!%p1552_p4), %v2135_v11 }
 0xf4b   : > { %v1837_v10 = vpop.eup %1836 }
 0xf4c   : > { %1028 = vrot.lane.b32.xlu1 %v1837_v10, %s2132_s12  ;;  %v1860_v10 = vld [vmem:[%s2708_s6] sm:$0xff] (!%p1552_p4)  }
 0xf4d   : > { %v1839_v5 = vpop.eup %1838 }
 0xf4e   : > { %v1022_v12 = vadd.f32 1.0, %v1839_v5  ;;  %v1861_v5 = vld [vmem:[%s2708_s6 + $0x8] sm:$0xff] (!%p1552_p4)  }
 0xf50   : > { %1840 = vrcp.f32 %v1022_v12 }
 0xf5a   : > { %v1841_v13 = vpop.eup %1840 }
 0xf5b   : > { %v1026_v7 = vmul.f32 %v1841_v13, %v957_v59 }
 0xfbe   : > { %v1029_v14 = vpop.permute.xlu1 %1028 }
 0xfbf   : > { %v1031_v3 = vmul.f32 %v1841_v13, %v1029_v14 }
 0xfc1   : > { %1033 = vrot.lane.b32.xlu0 %v1031_v3, %s2133_s17 }
0x1033   : > { %v1034_v15 = vpop.permute.xlu0 %1033 }
0x1034   : > { %v1036_v16 = vadd.f32 %v1034_v15, %v1026_v7 }
0x1036   : > { %1842 = vtanh.f32 %v1036_v16 }
0x1040   : > { %v1843_v17 = vpop.eup %1842 }
0x1041   : > { %1039 = vrot.lane.b32.xlu1 %v1843_v17, %s2132_s12 }
0x10b3   : > { %v1040_v19 = vpop.permute.xlu1 %1039 }
0x10b4   : > { %v2558_v20 = vmul.f32 %v1841_v13, %v1040_v19 }
0x10b6   : > { %v1050_v21 = vpack.c.bf16 %v2558_v20, %v2558_v20 }
0x10b8   : > { %1052 = vrot.lane.b32.xlu0 %v1050_v21, %s2133_s17 }
0x112a   : > { %v1053_v22 = vpop.permute.xlu0 %1052 }
0x112b   : > { %1659 = vmatmul.mubr.msk.bf16.vlgmr.msra.gmra.mrb[12].mxu1 %vm509_vm2, %v1053_v22 }
0x11fe   : > { %v1091_v24 = vpop.f32.mrb[12].mxu1 }
0x11ff   : > { %v1097_v25 = vadd.f32 %v1091_v24, %v1049_v23  ;;  %v1660_v26 = vpop.f32.mrb[13].mxu1 }
0x1200   : > { %v1094_v27 = vpop.f32.mrb[14].mxu1 }
0x1201   : > { %1844 = vtanh.f32 %v1097_v25  ;;  %v1661_v28 = vpop.f32.mrb[15].mxu1  ;;  %v1549_v30 = vmul.f32 -1.442695, %v1097_v25 }
0x1203   : > { %1846 = vpow2.f32 %v1549_v30 }
0x120b   : > { %v1845_v29 = vpop.eup %1844 }
0x120c   : > { %1107 = vrot.lane.b32.xlu1 %v1845_v29, %s2132_s12 }
0x120d   : > { %v1847_v31 = vpop.eup %1846 }
0x120e   : > { %v1101_v32 = vadd.f32 1.0, %v1847_v31 }
0x1210   : > { %1848 = vrcp.f32 %v1101_v32 }
0x121a   : > { %v1849_v33 = vpop.eup %1848 }
0x121b   : > { %v1105_v36 = vmul.f32 %v1849_v33, %v1036_v16 }
0x127e   : > { %v1108_v34 = vpop.permute.xlu1 %1107 }
0x127f   : > { %v1110_v35 = vmul.f32 %v1849_v33, %v1108_v34 }
0x1281   : > { %1112 = vrot.lane.b32.xlu0 %v1110_v35, %s2133_s17 }
0x12f3   : > { %v1113_v38 = vpop.permute.xlu0 %1112 }
0x12f4   : > { %v1115_v39 = vadd.f32 %v1113_v38, %v1105_v36 }
0x12f6   : > { %1850 = vtanh.f32 %v1115_v39 }
0x1300   : > { %v1851_v41 = vpop.eup %1850 }
0x1301   : > { %1118 = vrot.lane.b32.xlu1 %v1851_v41, %s2132_s12 }
0x1373   : > { %v1119_v42 = vpop.permute.xlu1 %1118 }
0x1374   : > { %v1121_v43 = vmul.f32 %v1849_v33, %v1119_v42 }
0x1376   : > { %v1129_v44 = vpack.c.bf16 %v1121_v43, %v1121_v43 }
0x1378   : > { %1131 = vrot.lane.b32.xlu0 %v1129_v44, %s2133_s17 }
0x13ea   : > { %v1132_v45 = vpop.permute.xlu0 %1131 }
0x13eb   : > { %1667 = vmatmul.mubr.msk.bf16.vlgmr.msra.gmra.mrb[16].mxu0 %vm509_vm2, %v1132_v45 }
0x13ec   : > { %1671 = vmatpush3.bf16.msra.mxu0 (!%p1552_p4), %v1860_v10  ;;  %1674 = vmatprep.mubr.msk.bf16.mxu0 (!%p1552_p4), %vm2136_vm4, %v2135_v11 }
0x13ed   : > { %1672 = vmatprep.subr.bf16.mxu0 (!%p1552_p4), %v2135_v11 }
0x13f0   : > { %1673 = vmatpush3.bf16.msra.mxu0 (!%p1552_p4), %v1861_v5 }
0x14be   : > { %v1170_v47 = vpop.f32.mrb[16].mxu0 }
0x14bf   : > { %v1176_v48 = vadd.f32 %v1170_v47, %v1128_v46  ;;  %v1668_v49 = vpop.f32.mrb[17].mxu0 }
0x14c0   : > { %v1173_v50 = vpop.f32.mrb[18].mxu0 }
0x14c1   : > { %1852 = vtanh.f32 %v1176_v48  ;;  %v1669_v51 = vpop.f32.mrb[19].mxu0  ;;  %v1551_v53 = vmul.f32 -1.442695, %v1176_v48  ;;  %v1553_v50 = vld [vmem:[%s2709_s7] ss:$0 sm:$0xff] (!%p1552_p4) }
0x14c3   : > { %1854 = vpow2.f32 %v1551_v53 }
0x14cb   : > { %v1853_v52 = vpop.eup %1852 }
0x14cc   : > { %1186 = vrot.lane.b32.xlu1 %v1853_v52, %s2132_s12 }
0x14cd   : > { %v1855_v54 = vpop.eup %1854 }
0x14ce   : > { %v1180_v55 = vadd.f32 1.0, %v1855_v54 }
0x14d0   : > { %1856 = vrcp.f32 %v1180_v55 }
0x14da   : > { %v1857_v56 = vpop.eup %1856 }
0x14db   : > { %v1184_v60 = vmul.f32 %v1857_v56, %v1115_v39 }
0x153e   : > { %v1187_v57 = vpop.permute.xlu1 %1186 }
0x153f   : > { %v1189_v59 = vmul.f32 %v1857_v56, %v1187_v57 }
0x1541   : > { %1191 = vrot.lane.b32.xlu0 %v1189_v59, %s2133_s17 }
0x1545   : > { %649 = vrot.lane.b32.xlu0 %v2485_v37, %s2133_s17 }
0x1549   : > { %807 = vrot.lane.b32.xlu0 %v2515_v18, %s2133_s17 }
0x154d   : > { %965 = vrot.lane.b32.xlu0 %v2544_v62, %s2133_s17 }
0x1551   : > { %1123 = vrot.lane.b32.xlu0 %v1121_v43, %s2133_s17 }
0x15b3   : > { %v1192_v61 = vpop.permute.xlu0 %1191 }
0x15b4   : > { %v1194_v63 = vadd.f32 %v1192_v61, %v1184_v60 }
0x15b6   : > { %1858 = vtanh.f32 %v1194_v63  ;;  %1209 = vrot.lane.b32.xlu0 %v1194_v63, %s2134_s19 }
0x15b7   : > { %v650_v0 = vpop.permute.xlu0 %649 }
0x15b8   : > { %653 = vst.msk [vmem:[#allocation5] sm:$0x3] %vm652_vm3, %v650_v0 }
0x15bb   : > { %v808_v1 = vpop.permute.xlu0 %807 }
0x15bc   : > { %811 = vst.msk [vmem:[#allocation5 + $0x4] sm:$0x3] %vm652_vm3, %v808_v1 }
0x15bf   : > { %v966_v37 = vpop.permute.xlu0 %965  ;;  %v1219_v17 = vld [vmem:[#allocation5] sm:$0x3] (!%p1552_p4) }
0x15c0   : > { %v1859_v18 = vpop.eup %1858  ;;  %969 = vst.msk [vmem:[#allocation5 + $0x8] sm:$0x3] %vm652_vm3, %v966_v37  ;;  %v1257_v28 = vrot.slane (!%p1552_p4), %v1219_v17, 1 }
0x15c1   : > { %1197 = vrot.lane.b32.xlu1 %v1859_v18, %s2132_s12 }
0x15c3   : > { %v1124_v62 = vpop.permute.xlu0 %1123  ;;  %v1221_v13 = vld [vmem:[#allocation5 + $0x4] sm:$0x3] (!%p1552_p4) }
0x15c4   : > { %1127 = vst.msk [vmem:[#allocation5 + $0xc] sm:$0x3] %vm652_vm3, %v1124_v62  ;;  %v1238_v19 = vrot.slane (!%p1552_p4), %v1221_v13, 6  ;;  %v1259_v30 = vrot.slane (!%p1552_p4), %v1221_v13, 7 }
0x15c5   : > { %728 = vrot.lane.b32.xlu1 %v2500_v58, %s2133_s17 }
0x15c7   : > { %v1223_v3 = vld [vmem:[#allocation5 + $0x8] sm:$0x3] (!%p1552_p4) }
0x15c8   : > { %v1244_v22 = vrot.slane (!%p1552_p4), %v1223_v3, 4  ;;  %v1263_v32 = vrot.slane (!%p1552_p4), %v1223_v3, 5 }
0x15c9   : > { %886 = vrot.lane.b32.xlu1 %v2530_v40, %s2133_s17 }
0x15cb   : > { %v1225_v15 = vld [vmem:[#allocation5 + $0xc] sm:$0x3] (!%p1552_p4) }
0x15cc   : > { %v1250_v26 = vrot.slane (!%p1552_p4), %v1225_v15, 2  ;;  %v1267_v41 = vrot.slane (!%p1552_p4), %v1225_v15, 3 }
0x15cd   : > { %1044 = vrot.lane.b32.xlu1 %v2558_v20, %s2133_s17 }
0x1628   : > { %v1210_v2 = vpop.permute.xlu0 %1209 }
0x1629   : > { %1212 = vst.msk [vmem:[#allocation3] sm:$0x3] %vm652_vm3, %v1210_v2  ;;  %1214 = vst.msk [vmem:[#allocation17] sm:$0x3] %vm652_vm3, %v1210_v2 }
0x1633   : > { %v1198_v4 = vpop.permute.xlu1 %1197 }
0x1634   : > { %v1200_v6 = vmul.f32 %v1857_v56, %v1198_v4 }
0x1636   : > { %1202 = vrot.lane.b32.xlu1 %v1200_v6, %s2133_s17 }
0x1637   : > { %v729_v8 = vpop.permute.xlu1 %728 }
0x1638   : > { %732 = vst.msk [vmem:[#allocation5 + $0x2] sm:$0x3] %vm652_vm3, %v729_v8 }
0x163b   : > { %v887_v9 = vpop.permute.xlu1 %886 }
0x163c   : > { %890 = vst.msk [vmem:[#allocation5 + $0x6] sm:$0x3] %vm652_vm3, %v887_v9 }
0x163f   : > { %v1045_v58 = vpop.permute.xlu1 %1044  ;;  %v1220_v12 = vld [vmem:[#allocation5 + $0x2] sm:$0x3] (!%p1552_p4) }
0x1640   : > { %1048 = vst.msk [vmem:[#allocation5 + $0xa] sm:$0x3] %vm652_vm3, %v1045_v58  ;;  %v1235_v16 = vrot.slane (!%p1552_p4), %v1220_v12, 7  ;;  %v1258_v35 = vsel (!%p1552_p4), %vm1236_vm5, %v1220_v12, %v1257_v28 }
0x1641   : > { %v1260_v39 = vsel (!%p1552_p4), %vm1239_vm6, %v1259_v30, %v1258_v35 }
0x1642   : > { %v1237_v21 = vsel (!%p1552_p4), %vm1236_vm5, %v1235_v16, %v1219_v17 }
0x1643   : > { %v1222_v14 = vld [vmem:[#allocation5 + $0x6] sm:$0x3] (!%p1552_p4)  ;;  %v1240_v25 = vsel (!%p1552_p4), %vm1239_vm6, %v1238_v19, %v1237_v21 }
0x1644   : > { %v1241_v20 = vrot.slane (!%p1552_p4), %v1222_v14, 5  ;;  %v1261_v31 = vrot.slane (!%p1552_p4), %v1222_v14, 6 }
0x1646   : > { %v1243_v27 = vsel (!%p1552_p4), %vm1242_vm7, %v1241_v20, %v1240_v25  ;;  %v1262_v42 = vsel (!%p1552_p4), %vm1242_vm7, %v1261_v31, %v1260_v39 }
0x1647   : > { %v1224_v7 = vld [vmem:[#allocation5 + $0xa] sm:$0x3] (!%p1552_p4)  ;;  %v1246_v29 = vsel (!%p1552_p4), %vm1245_vm8, %v1244_v22, %v1243_v27  ;;  %v1264_v44 = vsel (!%p1552_p4), %vm1245_vm8, %v1263_v32, %v1262_v42 }
0x1648   : > { %v1247_v23 = vrot.slane (!%p1552_p4), %v1224_v7, 3  ;;  %v1265_v36 = vrot.slane (!%p1552_p4), %v1224_v7, 4 }
0x164a   : > { %v1249_v33 = vsel (!%p1552_p4), %vm1248_vm9, %v1247_v23, %v1246_v29  ;;  %v1266_v46 = vsel (!%p1552_p4), %vm1248_vm9, %v1265_v36, %v1264_v44 }
0x164b   : > { %v1252_v38 = vsel (!%p1552_p4), %vm1251_vm10, %v1250_v26, %v1249_v33  ;;  %v1268_v47 = vsel (!%p1552_p4), %vm1251_vm10, %v1267_v41, %v1266_v46 }
0x16a4   : > { %1218 = sbr.rel (%p1552_p4) target bundleno = 6031 (0x178f), region = 76 }
0x16a8   : > { %v1203_v40 = vpop.permute.xlu1 %1202 }
0x16a9   : > { %1206 = vst.msk [vmem:[#allocation5 + $0xe] sm:$0x3] %vm652_vm3, %v1203_v40  ;;  %1207 = vst.msk [vmem:[#allocation2] sm:$0x3] %vm652_vm3, %v1203_v40 }
0x16aa   : > { %1213 = vst.msk [vmem:[#allocation15] sm:$0x3] %vm652_vm3, %v1203_v40 }
0x16b0   : > { %v1226_v24 = vld [vmem:[#allocation5 + $0xe] sm:$0x3] }
0x16b1   : > { %v1253_v34 = vrot.slane %v1226_v24, 1  ;;  %v1269_v43 = vrot.slane %v1226_v24, 2 }
0x16b3   : > { %v1255_v45 = vsel %vm1254_vm11, %v1253_v34, %v1252_v38  ;;  %v1270_v48 = vsel %vm1254_vm11, %v1269_v43, %v1268_v47 }
0x16b4   : > { %v1272_v49 = vpack.c.bf16 %v1270_v48, %v1255_v45 }
0x16b6   : > { %1675 = vmatmul.mubr.msk.bf16.vlgmr.msra.gmra.mrb[0].mxu0 %vm509_vm2, %v1272_v49 }
0x1789   : > { %v1333_v51 = vpop.f32.mrb[0].mxu0 }
0x178a   : > { %v1334_v52 = vadd.f32 %v1553_v50, %v1333_v51  ;;  %v1676_v53 = vpop.f32.mrb[1].mxu0 }
0x178b   : > { %v1336_v54 = vpop.f32.mrb[2].mxu0 }
0x178c   : > { %1341 = vst.msk [vmem:[#allocation14] sm:$0xff] %vm1340_vm12, %v1334_v52  ;;  %v1337_v55 = vadd.f32 %v1553_v50, %v1336_v54  ;;  %v1677_v56 = vpop.f32.mrb[3].mxu0 }
0x178e   : > { %1343 = vst.msk [vmem:[#allocation14 + $0x8] sm:$0xff] %vm1340_vm12, %v1337_v55 }
0x178f PF: > { %p1721_p7 = scmp.eq.s32.totalorder %s2301_s22, 2  ;;  %s2137_s26 = smov [#allocation15]  }
0x1790   : > { %s1366_s27 = sshll.u32 %s2137_s26, 4  ;;  %s1367_s27 = int_to_ptr.vmem [resolvable:$true] %s1366_s27 }
0x1791   : > { %s1978_s25 = scalar_lea.vmem %s1367_s27, 32  ;;  %p1985_p0 = scmp.lt.s32.totalorder %s1367_s27, %s1367_s27 }
0x1792   : > { %p1979_p9 = scmp.ne.s32.totalorder %s1367_s27, %s1978_s25  ;;  %p1986_p8 = scmp.lt.s32.totalorder %s1978_s25, %s1978_s25 }
0x1794   : > { %p1980_p12 = pnand %p1979_p9, %p1721_p7  ;;  %p1987_p2 = por %p1986_p8, %p1985_p0 }
0x1796   : > { %p1981_p10 = pneg %p1980_p12 }
0x1798   : > { %p1988_p13 = pnand %p1987_p2, %p1981_p10 }
0x179a   : > { %1991 = shalt.err (!%p1988_p13)
}
0x179b   : > { %s1992_s30 = scalar_lea.hbm %s2711_s9, 32 }
0x179c   : > { %p1993_p5 = scmp.ne.s32.totalorder %s2711_s9, %s1992_s30  ;;  %p1998_p1 = scmp.lt.u32.totalorder %s1992_s30, %s2711_s9 }
0x179e   : > { %p1994_p3 = pnand %p1993_p5, %p1721_p7 }
0x17a0   : > { %p1995_p11 = pneg %p1994_p3 }
0x17a2   : > { %p2000_p6 = pnand %p1998_p1, %p1995_p11 }
0x17a4   : > { %2003 = shalt.err (!%p2000_p6)
}
0x17a5   : > { %1693 = dma.vmem_to_hbm [thread:$0]  (%p1721_p7), %s1367_s27, 32, %s2711_s9, [#allocation16]  }
0x17a6   : > { %s2138_s28 = smov [#allocation14]  }
0x17a7   : > { %s1352_s2 = sshll.u32 %s2138_s28, 4  ;;  %s1353_s2 = int_to_ptr.vmem [resolvable:$true] %s1352_s2 }
0x17a8   : > { %s2004_s24 = scalar_lea.vmem %s1353_s2, 256  ;;  %p2011_p10 = scmp.lt.s32.totalorder %s1353_s2, %s1353_s2 }
0x17a9   : > { %p2005_p4 = scmp.ne.s32.totalorder %s1353_s2, %s2004_s24  ;;  %p2012_p0 = scmp.lt.s32.totalorder %s2004_s24, %s2004_s24 }
0x17ab   : > { %p2006_p9 = pnand %p2005_p4, %p1721_p7  ;;  %p2013_p8 = por %p2012_p0, %p2011_p10 }
0x17ad   : > { %p2007_p12 = pneg %p2006_p9 }
0x17af   : > { %p2014_p2 = pnand %p2013_p8, %p2007_p12 }
0x17b1   : > { %2017 = shalt.err (!%p2014_p2)
}
0x17b2   : > { %s2018_s11 = scalar_lea.hbm %s2710_s8, 256 }
0x17b3   : > { %p2019_p13 = scmp.ne.s32.totalorder %s2710_s8, %s2018_s11  ;;  %p2024_p11 = scmp.lt.u32.totalorder %s2018_s11, %s2710_s8 }
0x17b5   : > { %p2020_p5 = pnand %p2019_p13, %p1721_p7 }
0x17b7   : > { %p2021_p3 = pneg %p2020_p5 }
0x17b9   : > { %p2026_p1 = pnand %p2024_p11, %p2021_p3 }
0x17bb   : > { %2029 = shalt.err (!%p2026_p1)
}
0x17bc   : > { %s2139_s23 = smov 128   ;;  %s2140_s30 = smov 8  }
0x17bd   : > { %1691 = dma.vmem_to_hbm [thread:$0]  (%p1721_p7), %s1353_s2, 256, %s2710_s8, [#allocation8], %s2139_s23, %s2139_s23, %s2140_s30  }
0x17be   : > { %s2141_s1 = smov [#allocation17]  }
0x17bf   : > { %s1377_s12 = sshll.u32 %s2141_s1, 4  ;;  %s1378_s12 = int_to_ptr.vmem [resolvable:$true] %s1377_s12 }
0x17c0   : > { %s2030_s17 = scalar_lea.vmem %s1378_s12, 32  ;;  %p2037_p12 = scmp.lt.s32.totalorder %s1378_s12, %s1378_s12 }
0x17c1   : > { %p2031_p6 = scmp.ne.s32.totalorder %s1378_s12, %s2030_s17  ;;  %p2038_p10 = scmp.lt.s32.totalorder %s2030_s17, %s2030_s17 }
0x17c3   : > { %p2032_p4 = pnand %p2031_p6, %p1721_p7  ;;  %p2039_p0 = por %p2038_p10, %p2037_p12 }
0x17c5   : > { %p2033_p9 = pneg %p2032_p4 }
0x17c7   : > { %p2040_p8 = pnand %p2039_p0, %p2033_p9 }
0x17c9   : > { %2043 = shalt.err (!%p2040_p8)
}
0x17ca   : > { %s2044_s24 = scalar_lea.hbm %s2712_s10, 32 }
0x17cb   : > { %p2045_p2 = scmp.ne.s32.totalorder %s2712_s10, %s2044_s24  ;;  %p2050_p3 = scmp.lt.u32.totalorder %s2044_s24, %s2712_s10 }
0x17cd   : > { %p2046_p13 = pnand %p2045_p2, %p1721_p7 }
0x17cf   : > { %p2047_p5 = pneg %p2046_p13 }
0x17d1   : > { %p2052_p11 = pnand %p2050_p3, %p2047_p5 }
0x17d3   : > { %2055 = shalt.err (!%p2052_p11)
}
0x17d4   : > { %1695 = dma.vmem_to_hbm [thread:$0]  (%p1721_p7), %s1378_s12, 32, %s2712_s10, [#allocation16]  }
0x17d5   : > { %2093 = dma.done.wait (%p1721_p7), [#allocation8], 256  }
0x17d6   : > { %2095 = vsyncadd (%p1721_p7), [#allocation8], 4294967040 }
0x17d7   : > { %2097 = dma.done.wait (%p1721_p7), [#allocation16], 64  }
0x17d8   : > { %2099 = vsyncadd (%p1721_p7), [#allocation16], 4294967232 }
0x17d9 PF: > { %s28_s18 = sadd.s32 1, %s2122_s18   ;;  %s2742_s25 = sld [smem:[#allocation25_spill]] }
0x17da   : > { %p25_p1 = scmp.ge.s32.totalorder %s28_s18, 5   ;;  %s2743_s16 = sld [smem:[#allocation23_spill]] }
0x17db   : > { %s2744_s17 = sld [smem:[#allocation24_spill]]  ;;  %s2745_s13 = smov %s2106_s14 }
0x17dc   : > { %s2746_s14 = smov %s2110_s15  ;;  %27 = sbr.rel (!%p25_p1) target bundleno = 11 (0xb), region = 146 }
0x17df   : > { %s2747_s15 = smov %s2742_s25 }
0x17e3   :  { %1398 = vsyncpa [#allocation7], 1 }
0x17e4   :  { %1400 = vsyncpa [#allocation7 + $0x1], 1 }
0x17e5   :  { %1401 = vsyncpa [#allocation10], 1 }
0x17e6   :  { %1403 = vsyncpa [#allocation10 + $0x1], 1 }
0x17e7   :  { %1404 = vsyncpa [#allocation13], 1 }
0x17e8   :  { %1405 = vsyncpa [#allocation8], 1 }
0x17e9   :  { %1407 = vsyncpa [#allocation8 + $0x1], 1 }
0x17ea   :  { %1408 = vsyncpa [#allocation16], 1 }

</bundles_post_ra>
